<compile_context>
chip_gen: v7x
topology: tpu7x:2x2x1
jax: 0.10.0
libtpu: 0.0.40
codegen_flags: <defaults>
</compile_context>

<pallas_src>
import functools

import jax
import jax.numpy as jnp
from jax import lax
from jax.experimental import pallas as pl
from jax.experimental.pallas import tpu as pltpu

# Model hyper-parameters (PyTorch defaults used by StructureModule/IPABlock).
HEADS = 8
SCALAR_KEY = 16
SCALAR_VALUE = 16
POINT_KEY = 4
POINT_VALUE = 4
DEPTH = 2
EPS = 1e-8

_ROW_TILE = 256  # row-tile for the generic dense / LN+FF kernels


# ----------------------------------------------------------------------------
# Pallas kernels
# ----------------------------------------------------------------------------
def _dense_kernel(x_ref, w_ref, b_ref, *rest, relu):
    """y = x @ w + b (+ residual) (+ ReLU); x/w are bf16, accumulate in f32."""
    if len(rest) == 2:
        r_ref, o_ref = rest
    else:
        (o_ref,) = rest
        r_ref = None
    y = jnp.dot(x_ref[...], w_ref[...], preferred_element_type=jnp.float32)
    y = y + b_ref[...]
    if r_ref is not None:
        y = y + r_ref[...]
    if relu:
        y = jnp.maximum(y, 0.0)
    o_ref[...] = y


def dense(x, w, b=None, relu=False, residual=None):
    """Row-tiled Linear (+bias, +residual, +ReLU). bf16 MXU inputs, f32 out."""
    lead = x.shape[:-1]
    K = x.shape[-1]
    Nout = w.shape[1]
    x2 = x.reshape(-1, K).astype(jnp.bfloat16)
    M = x2.shape[0]
    if b is None:
        b = jnp.zeros((Nout,), jnp.float32)
    b2 = b.reshape(1, Nout).astype(jnp.float32)

    TM = M if M <= _ROW_TILE else _ROW_TILE
    grid = (pl.cdiv(M, TM),)

    in_specs = [
        pl.BlockSpec((TM, K), lambda i: (i, 0)),
        pl.BlockSpec((K, Nout), lambda i: (0, 0)),
        pl.BlockSpec((1, Nout), lambda i: (0, 0)),
    ]
    args = [x2, w.astype(jnp.bfloat16), b2]
    if residual is not None:
        in_specs.append(pl.BlockSpec((TM, Nout), lambda i: (i, 0)))
        args.append(residual.reshape(-1, Nout).astype(jnp.float32))

    out = pl.pallas_call(
        functools.partial(_dense_kernel, relu=relu),
        out_shape=jax.ShapeDtypeStruct((M, Nout), jnp.float32),
        grid=grid,
        in_specs=in_specs,
        out_specs=pl.BlockSpec((TM, Nout), lambda i: (i, 0)),
        compiler_params=pltpu.CompilerParams(
            dimension_semantics=("parallel",)),
    )(*args)
    return out.reshape(lead + (Nout,))


def _ln_dense_kernel(x_ref, g_ref, b_ref, w_ref, bw_ref, xln_ref, y_ref):
    """xln = LayerNorm(x); y = relu(xln @ w + bw)."""
    x = x_ref[...]
    mean = jnp.mean(x, axis=-1, keepdims=True)
    xc = x - mean
    var = jnp.mean(xc * xc, axis=-1, keepdims=True)
    xln = xc * lax.rsqrt(var + 1e-5) * g_ref[...] + b_ref[...]
    xln_ref[...] = xln
    y = jnp.dot(xln.astype(jnp.bfloat16), w_ref[...],
                preferred_element_type=jnp.float32) + bw_ref[...]
    y_ref[...] = jnp.maximum(y, 0.0)


def ln_dense_relu(x, g, bln, w, bw):
    """Fused LayerNorm + Linear + ReLU. Returns (layernormed_x, relu_out)."""
    lead = x.shape[:-1]
    C = x.shape[-1]
    Nout = w.shape[1]
    x2 = x.reshape(-1, C).astype(jnp.float32)
    M = x2.shape[0]
    TM = M if M <= _ROW_TILE else _ROW_TILE
    grid = (pl.cdiv(M, TM),)
    xln, y = pl.pallas_call(
        _ln_dense_kernel,
        out_shape=(jax.ShapeDtypeStruct((M, C), jnp.float32),
                   jax.ShapeDtypeStruct((M, Nout), jnp.float32)),
        grid=grid,
        in_specs=[
            pl.BlockSpec((TM, C), lambda i: (i, 0)),
            pl.BlockSpec((1, C), lambda i: (0, 0)),
            pl.BlockSpec((1, C), lambda i: (0, 0)),
            pl.BlockSpec((C, Nout), lambda i: (0, 0)),
            pl.BlockSpec((1, Nout), lambda i: (0, 0)),
        ],
        out_specs=(pl.BlockSpec((TM, C), lambda i: (i, 0)),
                   pl.BlockSpec((TM, Nout), lambda i: (i, 0))),
        compiler_params=pltpu.CompilerParams(
            dimension_semantics=("parallel",)),
    )(x2, g.reshape(1, C).astype(jnp.float32),
      bln.reshape(1, C).astype(jnp.float32),
      w.astype(jnp.bfloat16), bw.reshape(1, Nout).astype(jnp.float32))
    return xln.reshape(lead + (C,)), y.reshape(lead + (Nout,))


def _ff_tail_kernel(h_ref, w2_ref, b2_ref, w3_ref, b3_ref, r_ref,
                    g_ref, bln_ref, o_ref):
    """o = LayerNorm( relu(h @ w2 + b2) @ w3 + b3 + residual )."""
    t = jnp.dot(h_ref[...].astype(jnp.bfloat16), w2_ref[...],
                preferred_element_type=jnp.float32) + b2_ref[...]
    t = jnp.maximum(t, 0.0)
    t = jnp.dot(t.astype(jnp.bfloat16), w3_ref[...],
                preferred_element_type=jnp.float32) + b3_ref[...]
    t = t + r_ref[...]
    mean = jnp.mean(t, axis=-1, keepdims=True)
    tc = t - mean
    var = jnp.mean(tc * tc, axis=-1, keepdims=True)
    o_ref[...] = tc * lax.rsqrt(var + 1e-5) * g_ref[...] + bln_ref[...]


def ff_tail(h, w2, b2, w3, b3, residual, g, bln):
    lead = h.shape[:-1]
    C = h.shape[-1]
    Cout = w3.shape[1]
    h2 = h.reshape(-1, C).astype(jnp.float32)
    M = h2.shape[0]
    TM = M if M <= _ROW_TILE else _ROW_TILE
    grid = (pl.cdiv(M, TM),)
    out = pl.pallas_call(
        _ff_tail_kernel,
        out_shape=jax.ShapeDtypeStruct((M, Cout), jnp.float32),
        grid=grid,
        in_specs=[
            pl.BlockSpec((TM, C), lambda i: (i, 0)),
            pl.BlockSpec((C, C), lambda i: (0, 0)),
            pl.BlockSpec((1, C), lambda i: (0, 0)),
            pl.BlockSpec((C, Cout), lambda i: (0, 0)),
            pl.BlockSpec((1, Cout), lambda i: (0, 0)),
            pl.BlockSpec((TM, Cout), lambda i: (i, 0)),
            pl.BlockSpec((1, Cout), lambda i: (0, 0)),
            pl.BlockSpec((1, Cout), lambda i: (0, 0)),
        ],
        out_specs=pl.BlockSpec((TM, Cout), lambda i: (i, 0)),
        compiler_params=pltpu.CompilerParams(
            dimension_semantics=("parallel",)),
    )(h2, w2.astype(jnp.bfloat16), b2.reshape(1, C).astype(jnp.float32),
      w3.astype(jnp.bfloat16), b3.reshape(1, Cout).astype(jnp.float32),
      residual.reshape(-1, Cout).astype(jnp.float32),
      g.reshape(1, Cout).astype(jnp.float32),
      bln.reshape(1, Cout).astype(jnp.float32))
    return out.reshape(lead + (Cout,))


def _ipa_attn_kernel(scal_ref, qs_ref, ks_ref, qp_ref, kp_ref, v_ref,
                     wp_ref, pair_ref, o_ref,
                     *, scalar_scale, point_scale, pair_scale):
    h = pl.program_id(1)
    pw = scal_ref[0, h]        # softplus(point_weight[h])   (SMEM scalar)
    bp = scal_ref[1, h]        # pair-bias bias term          (SMEM scalar)

    # scalar attention logits: q @ k^T  (bf16 MXU, f32 accumulate)
    logits = lax.dot_general(
        qs_ref[...], ks_ref[...], (((1,), (1,)), ((), ())),
        preferred_element_type=jnp.float32) * scalar_scale

    # point logits: ||q_i - k_j||^2 = |q|^2 + |k|^2 - 2 q.k  (clamped >= 0)
    qp = qp_ref[...]
    kp = kp_ref[...]
    q_sq = jnp.sum(qp * qp, axis=-1, keepdims=True)           # (N, 1)
    k_sq = jnp.sum(kp * kp, axis=-1, keepdims=True)           # (N, 1)
    qk = lax.dot_general(qp, kp, (((1,), (1,)), ((), ())),
                         preferred_element_type=jnp.float32)
    dist = jnp.maximum(q_sq + k_sq.T - 2.0 * qk, 0.0)
    logits = logits + (-0.5 * point_scale) * pw * dist

    # pairwise-representation bias, projected in-kernel:
    #   bias[i,j] = sum_d pair[i,j,d] * w_pair[d,h] + b_pair[h]
    pair = pair_ref[...]                                       # (N, N, DP)
    w = wp_ref[...]                                            # (1, DP)
    bias = jnp.sum(pair * w[None, :, :], axis=-1) + bp         # (N, N)
    logits = logits + bias * pair_scale

    # softmax over keys (f32; divide on the EUP)
    m = jnp.max(logits, axis=-1, keepdims=True)
    e = jnp.exp(logits - m)
    attn = e * pl.reciprocal(jnp.sum(e, axis=-1, keepdims=True), approx=True)

    # fused scalar + point value aggregation: one lane-dense matmul
    o_v = jnp.dot(attn.astype(jnp.bfloat16), v_ref[...],
                  preferred_element_type=jnp.float32)          # (N, DV + PV*3)

    # pairwise aggregation, vectorised: out[i,d] = sum_j attn[i,j] pair[i,j,d]
    o_pr = jnp.sum(attn[:, :, None] * pair, axis=1)            # (N, DP)

    o_ref[...] = jnp.concatenate([o_v, o_pr], axis=-1)


def ipa_attention_core(scal, qs, ks, qp, kp, vcat, wpair, pair,
                       scalar_scale, point_scale, pair_scale):
    B, H, N, DK = qs.shape
    P3 = qp.shape[-1]
    DVC = vcat.shape[-1]
    DP = pair.shape[-1]
    DO = DVC + DP

    kernel = functools.partial(
        _ipa_attn_kernel, scalar_scale=scalar_scale,
        point_scale=point_scale, pair_scale=pair_scale)

    def bh(d):
        return pl.BlockSpec((None, None, N, d), lambda b, h: (b, h, 0, 0))

    return pl.pallas_call(
        kernel,
        grid=(B, H),
        in_specs=[
            pl.BlockSpec(memory_space=pltpu.MemorySpace.SMEM),   # (2,H) scalars
            bh(DK), bh(DK),                                      # scalar q, k
            bh(P3), bh(P3),                                      # point q, k
            bh(DVC),                                             # [v_s | v_p]
            pl.BlockSpec((None, 1, DP), lambda b, h: (h, 0, 0)),  # w_pair col
            # pair block index depends only on b -> reused across the inner
            # h grid axis without re-DMA.
            pl.BlockSpec((None, N, N, DP), lambda b, h: (b, 0, 0, 0)),
        ],
        out_specs=bh(DO),
        out_shape=jax.ShapeDtypeStruct((B, H, N, DO), jnp.float32),
        compiler_params=pltpu.CompilerParams(
            dimension_semantics=("parallel", "parallel"),
            vmem_limit_bytes=64 * 1024 * 1024),
    )(scal, qs, ks, qp, kp, vcat, wpair, pair)


# ----------------------------------------------------------------------------
# Plain-JAX glue (quaternion algebra, frame updates, head plumbing)
# ----------------------------------------------------------------------------
def quaternion_raw_multiply(a, b):
    aw, ax, ay, az = a[..., 0], a[..., 1], a[..., 2], a[..., 3]
    bw, bx, by, bz = b[..., 0], b[..., 1], b[..., 2], b[..., 3]
    ow = aw * bw - ax * bx - ay * by - az * bz
    ox = aw * bx + ax * bw + ay * bz - az * by
    oy = aw * by - ax * bz + ay * bw + az * bx
    oz = aw * bz + ax * by - ay * bx + az * bw
    return jnp.stack((ow, ox, oy, oz), axis=-1)


def quaternion_to_matrix(q):
    r, i, j, k = q[..., 0], q[..., 1], q[..., 2], q[..., 3]
    two_s = 2.0 / jnp.sum(q * q, axis=-1)
    o = jnp.stack((
        1 - two_s * (j * j + k * k), two_s * (i * j - k * r), two_s * (i * k + j * r),
        two_s * (i * j + k * r), 1 - two_s * (i * i + k * k), two_s * (j * k - i * r),
        two_s * (i * k - j * r), two_s * (j * k + i * r), 1 - two_s * (i * i + j * j),
    ), axis=-1)
    return o.reshape(q.shape[:-1] + (3, 3))


def invariant_point_attention(p, x, pair, rotations, translations):
    B, N, C = x.shape
    H, DK, DV, PK, PV = HEADS, SCALAR_KEY, SCALAR_VALUE, POINT_KEY, POINT_VALUE
    num_logits = 3
    scalar_scale = (num_logits * DK) ** -0.5
    point_scale = ((num_logits * PK) * (9.0 / 2.0)) ** -0.5
    pair_scale = num_logits ** -0.5

    # fused QKV projection: one MXU pass over x, then slice
    w_fused = jnp.concatenate(
        [p['wq_s'], p['wk_s'], p['wv_s'], p['wq_p'], p['wk_p'], p['wv_p']],
        axis=1)
    qkv = dense(x, w_fused)                                  # (B, N, 672)

    def split_heads(t, d):                  # (B, N, H*d) -> (B, H, N, d)
        return t.reshape(B, N, H, d).transpose(0, 2, 1, 3)

    def split_point(t, d):                  # (B, N, H*d*3) -> (B, H, N, d, 3)
        return t.reshape(B, N, H, d, 3).transpose(0, 2, 1, 3, 4)

    o0 = 0
    o1 = o0 + H * DK
    o2 = o1 + H * DK
    o3 = o2 + H * DV
    o4 = o3 + H * PK * 3
    o5 = o4 + H * PK * 3
    o6 = o5 + H * PV * 3
    q_s = split_heads(qkv[..., o0:o1], DK)
    k_s = split_heads(qkv[..., o1:o2], DK)
    v_s = split_heads(qkv[..., o2:o3], DV)
    q_p = split_point(qkv[..., o3:o4], PK)
    k_p = split_point(qkv[..., o4:o5], PK)
    v_p = split_point(qkv[..., o5:o6], PV)

    # rotate / translate the qkv points into the global frame (JAX glue)
    t_b = translations[:, None, :, None, :]                  # (B, 1, N, 1, 3)

    def to_global(pts):
        return jnp.einsum('bhndc,bncr->bhndr', pts, rotations) + t_b

    q_pg = to_global(q_p).reshape(B, H, N, PK * 3)
    k_pg = to_global(k_p).reshape(B, H, N, PK * 3)
    v_pg = to_global(v_p).reshape(B, H, N, PV * 3)

    # scalar + point values concatenated -> single lane-dense aggregation
    v_cat = jnp.concatenate([v_s, v_pg], axis=-1).astype(jnp.bfloat16)

    # per-head scalars -> SMEM
    scal = jnp.stack([jax.nn.softplus(p['point_weights']),
                      p['b_pair']], axis=0).astype(jnp.float32)   # (2, H)
    # per-head pair-bias projection column -> (H, 1, C)
    wpair = p['w_pair'].T.reshape(H, 1, C).astype(jnp.float32)

    out = ipa_attention_core(
        scal, q_s.astype(jnp.bfloat16), k_s.astype(jnp.bfloat16),
        q_pg.astype(jnp.float32), k_pg.astype(jnp.float32),
        v_cat, wpair, pair.astype(jnp.float32),
        scalar_scale, point_scale, pair_scale)                # (B, H, N, 60)

    res_scalar = out[..., :DV]
    res_points_g = out[..., DV:DV + PV * 3]
    res_pair = out[..., DV + PV * 3:]

    # rotate aggregated points back into the local frame (JAX glue)
    pts = res_points_g.reshape(B, H, N, PV, 3) - t_b
    pts_local = jnp.einsum('bhndc,bnrc->bhndr', pts, rotations)
    pts_norm = jnp.sqrt(jnp.sum(pts_local * pts_local, axis=-1) + EPS)

    def merge_heads(t):                     # (B, H, N, ...) -> (B, N, H*...)
        return jnp.moveaxis(t, 1, 2).reshape(B, N, -1)

    out_cat = jnp.concatenate([
        merge_heads(res_scalar),
        merge_heads(pts_local),
        merge_heads(pts_norm),
        merge_heads(res_pair),
    ], axis=-1)                             # (B, N, H*(DV + 4*PV + C)) = 512

    # output projection with the residual add fused in
    return dense(out_cat, p['w_out'], p['b_out'], residual=x)


def ipa_block(p, x, pair, rotations, translations):
    # post-norm IPABlock: attn -> +res -> LN -> FF(relu,relu,lin) -> +res -> LN
    x = invariant_point_attention(p['ipa'], x, pair, rotations, translations)
    x_ln, h1 = ln_dense_relu(x, p['attn_norm_g'], p['attn_norm_b'],
                             p['ff_w1'], p['ff_b1'])
    return ff_tail(h1, p['ff_w2'], p['ff_b2'], p['ff_w3'], p['ff_b3'],
                   x_ln, p['ff_norm_g'], p['ff_norm_b'])


def structure_module(p, single, pair, translations, quaternions):
    rotations = quaternion_to_matrix(quaternions)
    s = ipa_block(p['ipa_block'], single, pair, rotations, translations)
    updates = dense(s, p['out_proj_w'], p['out_proj_b'])          # (B, N, 6)
    q_upd, t_upd = updates[..., :3], updates[..., 3:]
    q_upd = jnp.concatenate(
        [jnp.ones(q_upd.shape[:-1] + (1,), q_upd.dtype), q_upd], axis=-1)
    quaternions = quaternion_raw_multiply(quaternions, q_upd)
    translations = translations + jnp.einsum('bnc,bncr->bnr', t_upd, rotations)
    return translations, quaternions


def predict_structure(params, msa_repr, pair_repr, key, depth=DEPTH):
    B, _, N, _ = msa_repr.shape
    translations = jax.random.normal(key, (B, N, 3), dtype=jnp.float32)
    quaternions = jnp.broadcast_to(
        jnp.array([1.0, 0.0, 0.0, 0.0], jnp.float32), (B, N, 4))
    single = msa_repr[:, 0, :, :]
    for _ in range(depth):
        translations, quaternions = structure_module(
            params['structure_module'], single, pair_repr, translations,
            quaternions)
    points_local = dense(single, params['to_points_w'], params['to_points_b'])
    rotations = quaternion_to_matrix(quaternions)
    coords = jnp.einsum('bnc,bncd->bnd', points_local, rotations) + translations
    return coords


# ----------------------------------------------------------------------------
# Deterministic parameter initialisation (synthetic weights)
# ----------------------------------------------------------------------------
def init_params(key, C):
    H, DK, DV, PK, PV = HEADS, SCALAR_KEY, SCALAR_VALUE, POINT_KEY, POINT_VALUE
    keys = iter(jax.random.split(key, 16))

    def lin_w(fan_in, fan_out):
        return (jax.random.normal(next(keys), (fan_in, fan_out), jnp.float32)
                / jnp.sqrt(jnp.float32(fan_in)))

    ipa = dict(
        wq_s=lin_w(C, H * DK), wk_s=lin_w(C, H * DK), wv_s=lin_w(C, H * DV),
        wq_p=lin_w(C, H * PK * 3), wk_p=lin_w(C, H * PK * 3),
        wv_p=lin_w(C, H * PV * 3),
        w_pair=lin_w(C, H), b_pair=jnp.zeros((H,), jnp.float32),
        point_weights=jnp.full((H,), jnp.log(jnp.exp(1.0) - 1.0), jnp.float32),
        w_out=lin_w(H * (DV + C + PV * 4), C),
        b_out=jnp.zeros((C,), jnp.float32),
    )
    block = dict(
        ipa=ipa,
        attn_norm_g=jnp.ones((C,), jnp.float32),
        attn_norm_b=jnp.zeros((C,), jnp.float32),
        ff_w1=lin_w(C, C), ff_b1=jnp.zeros((C,), jnp.float32),
        ff_w2=lin_w(C, C), ff_b2=jnp.zeros((C,), jnp.float32),
        ff_w3=lin_w(C, C), ff_b3=jnp.zeros((C,), jnp.float32),
        ff_norm_g=jnp.ones((C,), jnp.float32),
        ff_norm_b=jnp.zeros((C,), jnp.float32),
    )
    sm = dict(ipa_block=block,
              out_proj_w=lin_w(C, 6), out_proj_b=jnp.zeros((6,), jnp.float32))
    return dict(structure_module=sm,
                to_points_w=lin_w(C, 3), to_points_b=jnp.zeros((3,), jnp.float32))


if __name__ == "__main__":
    B, S, N, C = 2, 4, 8, 32
    key = jax.random.PRNGKey(0)
    k_params, k_msa, k_pair, k_trans = jax.random.split(key, 4)

    params = init_params(k_params, C)
    msa_repr = jax.random.normal(k_msa, (B, S, N, C), jnp.float32)
    pair_repr = jax.random.normal(k_pair, (B, N, N, C), jnp.float32)

    forward = jax.jit(predict_structure)
    coords = forward(params, msa_repr, pair_repr, k_trans)
    coords = jax.block_until_ready(coords)
    assert coords.shape == (B, N, 3)
    assert bool(jnp.all(jnp.isfinite(coords)))
    print("KERNEL_OK")
</pallas_src>

<mosaic_0001>
module attributes {stable_mosaic.version = 11 : i64} {
  func.func @_dense_kernel(%arg0: i32, %arg1: memref<16x32xbf16, #tpu.memory_space<vmem>>, %arg2: memref<32x672xbf16, #tpu.memory_space<vmem>>, %arg3: memref<1x672xf32, #tpu.memory_space<vmem>>, %arg4: memref<16x672xf32, #tpu.memory_space<vmem>>) attributes {dimension_semantics = [#tpu.dimension_semantics<parallel>], iteration_bounds = array<i64: 1>, scalar_prefetch = 0 : i64, scratch_operands = 0 : i64, tpu.core_type = #tpu.core_type<tc>, window_params = [{transform_indices = @transform_0, window_bounds = array<i64: 16, 32>}, {pipeline_mode = #tpu.pipeline_mode<synchronous>, transform_indices = @transform_1, window_bounds = array<i64: 32, 672>}, {pipeline_mode = #tpu.pipeline_mode<synchronous>, transform_indices = @transform_2, window_bounds = array<i64: 1, 672>}, {transform_indices = @transform_3, window_bounds = array<i64: 16, 672>}]} {
    %c0 = arith.constant 0 : index
    %c0_0 = arith.constant 0 : index
    %0 = vector.load %arg1[%c0, %c0_0] : memref<16x32xbf16, #tpu.memory_space<vmem>>, vector<16x32xbf16>
    %c0_1 = arith.constant 0 : index
    %c0_2 = arith.constant 0 : index
    %1 = vector.load %arg2[%c0_1, %c0_2] : memref<32x672xbf16, #tpu.memory_space<vmem>>, vector<32x672xbf16>
    %cst = arith.constant dense<0.000000e+00> : vector<16x672xf32>
    %2 = tpu.matmul %0, %1, %cst {dimension_numbers = #tpu.dot_dimension_numbers<[1], [0], [0], [1], [0, 0, 1, 1], [], []>} : vector<16x32xbf16>, vector<32x672xbf16>, vector<16x672xf32> -> vector<16x672xf32>
    %c0_3 = arith.constant 0 : index
    %c0_4 = arith.constant 0 : index
    %3 = vector.load %arg3[%c0_3, %c0_4] : memref<1x672xf32, #tpu.memory_space<vmem>>, vector<1x672xf32>
    %4 = vector.broadcast %3 : vector<1x672xf32> to vector<16x672xf32>
    %5 = arith.addf %2, %4 : vector<16x672xf32>
    %c0_5 = arith.constant 0 : index
    %c0_6 = arith.constant 0 : index
    %6 = vector.load %arg4[%c0_5, %c0_6] : memref<16x672xf32, #tpu.memory_space<vmem>>, vector<16x672xf32>
    tpu.vector_store %arg4[%c0_5, %c0_6], %5 {strides = array<i32>} : memref<16x672xf32, #tpu.memory_space<vmem>>, vector<16x672xf32>,
    return
  }
  func.func @transform_0(%arg0: i32) -> (i32, i32) {
    %c0_i32 = arith.constant 0 : i32
    %c0_i32_0 = arith.constant 0 : i32
    return %arg0, %c0_i32 : i32, i32
  }
  func.func @transform_1(%arg0: i32) -> (i32, i32) {
    %c0_i32 = arith.constant 0 : i32
    %c0_i32_0 = arith.constant 0 : i32
    %c0_i32_1 = arith.constant 0 : i32
    return %c0_i32, %c0_i32_0 : i32, i32
  }
  func.func @transform_2(%arg0: i32) -> (i32, i32) {
    %c0_i32 = arith.constant 0 : i32
    %c0_i32_0 = arith.constant 0 : i32
    %c0_i32_1 = arith.constant 0 : i32
    return %c0_i32, %c0_i32_0 : i32, i32
  }
  func.func @transform_3(%arg0: i32) -> (i32, i32) {
    %c0_i32 = arith.constant 0 : i32
    %c0_i32_0 = arith.constant 0 : i32
    return %arg0, %c0_i32 : i32, i32
  }
}

module attributes {stable_mosaic.version = 11 : i64} {
  func.func @_ipa_attn_kernel(%arg0: i32, %arg1: i32, %arg2: memref<2x8xf32, #tpu.memory_space<smem>>, %arg3: memref<1x1x8x16xbf16, #tpu.memory_space<vmem>>, %arg4: memref<1x1x8x16xbf16, #tpu.memory_space<vmem>>, %arg5: memref<1x1x8x12xf32, #tpu.memory_space<vmem>>, %arg6: memref<1x1x8x12xf32, #tpu.memory_space<vmem>>, %arg7: memref<1x1x8x28xbf16, #tpu.memory_space<vmem>>, %arg8: memref<1x1x32xf32, #tpu.memory_space<vmem>>, %arg9: memref<1x8x8x32xf32, #tpu.memory_space<vmem>>, %arg10: memref<1x1x8x60xf32, #tpu.memory_space<vmem>>) attributes {dimension_semantics = [#tpu.dimension_semantics<parallel>, #tpu.dimension_semantics<parallel>], iteration_bounds = array<i64: 2, 8>, scalar_prefetch = 0 : i64, scratch_operands = 0 : i64, tpu.core_type = #tpu.core_type<tc>, window_params = [{transform_indices = @transform_0, window_bounds = array<i64: 2, 8>}, {transform_indices = @transform_1, window_bounds = array<i64: 1, 1, 8, 16>}, {transform_indices = @transform_2, window_bounds = array<i64: 1, 1, 8, 16>}, {transform_indices = @transform_3, window_bounds = array<i64: 1, 1, 8, 12>}, {transform_indices = @transform_4, window_bounds = array<i64: 1, 1, 8, 12>}, {transform_indices = @transform_5, window_bounds = array<i64: 1, 1, 8, 28>}, {transform_indices = @transform_6, window_bounds = array<i64: 1, 1, 32>}, {transform_indices = @transform_7, window_bounds = array<i64: 1, 8, 8, 32>}, {transform_indices = @transform_8, window_bounds = array<i64: 1, 1, 8, 60>}]} {
    %c0 = arith.constant 0 : index
    %0 = arith.index_cast %arg1 : i32 to index
    %1 = memref.load %arg2[%c0, %0] : memref<2x8xf32, #tpu.memory_space<smem>>
    %c1 = arith.constant 1 : index
    %2 = arith.index_cast %arg1 : i32 to index
    %3 = memref.load %arg2[%c1, %2] : memref<2x8xf32, #tpu.memory_space<smem>>
    %c0_0 = arith.constant 0 : index
    %c0_1 = arith.constant 0 : index
    %c0_2 = arith.constant 0 : index
    %c0_3 = arith.constant 0 : index
    %4 = vector.load %arg3[%c0_0, %c0_1, %c0_2, %c0_3] : memref<1x1x8x16xbf16, #tpu.memory_space<vmem>>, vector<1x1x8x16xbf16>
    %5 = vector.shape_cast %4 : vector<1x1x8x16xbf16> to vector<8x16xbf16>
    %c0_4 = arith.constant 0 : index
    %c0_5 = arith.constant 0 : index
    %c0_6 = arith.constant 0 : index
    %c0_7 = arith.constant 0 : index
    %6 = vector.load %arg4[%c0_4, %c0_5, %c0_6, %c0_7] : memref<1x1x8x16xbf16, #tpu.memory_space<vmem>>, vector<1x1x8x16xbf16>
    %7 = vector.shape_cast %6 : vector<1x1x8x16xbf16> to vector<8x16xbf16>
    %cst = arith.constant dense<0.000000e+00> : vector<8x8xf32>
    %8 = tpu.matmul %5, %7, %cst {dimension_numbers = #tpu.dot_dimension_numbers<[1], [1], [0], [0], [0, 0, 1, 0], [], []>} : vector<8x16xbf16>, vector<8x16xbf16>, vector<8x8xf32> -> vector<8x8xf32>
    %cst_8 = arith.constant 0.144337565 : f32
    %9 = vector.broadcast %cst_8 : f32 to vector<8x8xf32>
    %10 = arith.mulf %8, %9 : vector<8x8xf32>
    %c0_9 = arith.constant 0 : index
    %c0_10 = arith.constant 0 : index
    %c0_11 = arith.constant 0 : index
    %c0_12 = arith.constant 0 : index
    %11 = vector.load %arg5[%c0_9, %c0_10, %c0_11, %c0_12] : memref<1x1x8x12xf32, #tpu.memory_space<vmem>>, vector<1x1x8x12xf32>
    %12 = vector.shape_cast %11 : vector<1x1x8x12xf32> to vector<8x12xf32>
    %c0_13 = arith.constant 0 : index
    %c0_14 = arith.constant 0 : index
    %c0_15 = arith.constant 0 : index
    %c0_16 = arith.constant 0 : index
    %13 = vector.load %arg6[%c0_13, %c0_14, %c0_15, %c0_16] : memref<1x1x8x12xf32, #tpu.memory_space<vmem>>, vector<1x1x8x12xf32>
    %14 = vector.shape_cast %13 : vector<1x1x8x12xf32> to vector<8x12xf32>
    %15 = arith.mulf %12, %12 : vector<8x12xf32>
    %cst_17 = arith.constant dense<0.000000e+00> : vector<8xf32>
    %16 = vector.multi_reduction <add>, %15, %cst_17 [1] : vector<8x12xf32> to vector<8xf32>
    %17 = vector.shape_cast %16 : vector<8xf32> to vector<8x1xf32>
    %18 = arith.mulf %14, %14 : vector<8x12xf32>
    %cst_18 = arith.constant dense<0.000000e+00> : vector<8xf32>
    %19 = vector.multi_reduction <add>, %18, %cst_18 [1] : vector<8x12xf32> to vector<8xf32>
    %20 = vector.shape_cast %19 : vector<8xf32> to vector<8x1xf32>
    %cst_19 = arith.constant dense<0.000000e+00> : vector<8x8xf32>
    %21 = tpu.matmul %12, %14, %cst_19 {dimension_numbers = #tpu.dot_dimension_numbers<[1], [1], [0], [0], [0, 0, 1, 0], [], []>} : vector<8x12xf32>, vector<8x12xf32>, vector<8x8xf32> -> vector<8x8xf32>
    %22 = tpu.transpose %20, [1, 0] : vector<8x1xf32> -> vector<1x8xf32>
    %23 = vector.broadcast %17 : vector<8x1xf32> to vector<8x8xf32>
    %24 = vector.broadcast %22 : vector<1x8xf32> to vector<8x8xf32>
    %25 = arith.addf %23, %24 : vector<8x8xf32>
    %cst_20 = arith.constant 2.000000e+00 : f32
    %26 = vector.broadcast %cst_20 : f32 to vector<8x8xf32>
    %27 = arith.mulf %26, %21 : vector<8x8xf32>
    %28 = arith.subf %25, %27 : vector<8x8xf32>
    %cst_21 = arith.constant 0.000000e+00 : f32
    %29 = vector.broadcast %cst_21 : f32 to vector<8x8xf32>
    %30 = arith.maximumf %28, %29 : vector<8x8xf32>
    %cst_22 = arith.constant -0.0680413842 : f32
    %31 = arith.mulf %cst_22, %1 : f32
    %32 = vector.broadcast %31 : f32 to vector<8x8xf32>
    %33 = arith.mulf %32, %30 : vector<8x8xf32>
    %34 = arith.addf %10, %33 : vector<8x8xf32>
    %c0_23 = arith.constant 0 : index
    %c0_24 = arith.constant 0 : index
    %c0_25 = arith.constant 0 : index
    %c0_26 = arith.constant 0 : index
    %35 = vector.load %arg9[%c0_23, %c0_24, %c0_25, %c0_26] : memref<1x8x8x32xf32, #tpu.memory_space<vmem>>, vector<1x8x8x32xf32>
    %36 = vector.shape_cast %35 : vector<1x8x8x32xf32> to vector<8x8x32xf32>
    %c0_27 = arith.constant 0 : index
    %c0_28 = arith.constant 0 : index
    %c0_29 = arith.constant 0 : index
    %37 = vector.load %arg8[%c0_27, %c0_28, %c0_29] : memref<1x1x32xf32, #tpu.memory_space<vmem>>, vector<1x1x32xf32>
    %38 = vector.shape_cast %37 : vector<1x1x32xf32> to vector<1x32xf32>
    %39 = vector.shape_cast %38 : vector<1x32xf32> to vector<1x1x32xf32>
    %40 = vector.broadcast %39 : vector<1x1x32xf32> to vector<8x8x32xf32>
    %41 = arith.mulf %36, %40 : vector<8x8x32xf32>
    %cst_30 = arith.constant dense<0.000000e+00> : vector<8x8xf32>
    %42 = vector.multi_reduction <add>, %41, %cst_30 [2] : vector<8x8x32xf32> to vector<8x8xf32>
    %43 = vector.broadcast %3 : f32 to vector<8x8xf32>
    %44 = arith.addf %42, %43 : vector<8x8xf32>
    %cst_31 = arith.constant 0.577350259 : f32
    %45 = vector.broadcast %cst_31 : f32 to vector<8x8xf32>
    %46 = arith.mulf %44, %45 : vector<8x8xf32>
    %47 = arith.addf %34, %46 : vector<8x8xf32>
    %cst_32 = arith.constant dense<0xFF800000> : vector<8xf32>
    %48 = vector.multi_reduction <maximumf>, %47, %cst_32 [1] : vector<8x8xf32> to vector<8xf32>
    %49 = vector.shape_cast %48 : vector<8xf32> to vector<8x1xf32>
    %50 = vector.broadcast %49 : vector<8x1xf32> to vector<8x8xf32>
    %51 = arith.subf %47, %50 : vector<8x8xf32>
    %52 = math.exp %51 : vector<8x8xf32>
    %cst_33 = arith.constant dense<0.000000e+00> : vector<8xf32>
    %53 = vector.multi_reduction <add>, %52, %cst_33 [1] : vector<8x8xf32> to vector<8xf32>
    %54 = vector.shape_cast %53 : vector<8xf32> to vector<8x1xf32>
    %55 = tpu.reciprocal %54 {approx = true} : vector<8x1xf32> -> vector<8x1xf32>
    %56 = vector.broadcast %55 : vector<8x1xf32> to vector<8x8xf32>
    %57 = arith.mulf %52, %56 : vector<8x8xf32>
    %58 = arith.truncf %57 : vector<8x8xf32> to vector<8x8xbf16>
    %c0_34 = arith.constant 0 : index
    %c0_35 = arith.constant 0 : index
    %c0_36 = arith.constant 0 : index
    %c0_37 = arith.constant 0 : index
    %59 = vector.load %arg7[%c0_34, %c0_35, %c0_36, %c0_37] : memref<1x1x8x28xbf16, #tpu.memory_space<vmem>>, vector<1x1x8x28xbf16>
    %60 = vector.shape_cast %59 : vector<1x1x8x28xbf16> to vector<8x28xbf16>
    %cst_38 = arith.constant dense<0.000000e+00> : vector<8x28xf32>
    %61 = tpu.matmul %58, %60, %cst_38 {dimension_numbers = #tpu.dot_dimension_numbers<[1], [0], [0], [1], [0, 0, 1, 1], [], []>} : vector<8x8xbf16>, vector<8x28xbf16>, vector<8x28xf32> -> vector<8x28xf32>
    %62 = vector.shape_cast %57 : vector<8x8xf32> to vector<8x8x1xf32>
    %63 = vector.broadcast %62 : vector<8x8x1xf32> to vector<8x8x32xf32>
    %64 = arith.mulf %63, %36 : vector<8x8x32xf32>
    %cst_39 = arith.constant dense<0.000000e+00> : vector<8x32xf32>
    %65 = vector.multi_reduction <add>, %64, %cst_39 [1] : vector<8x8x32xf32> to vector<8x32xf32>
    %66 = tpu.concatenate %61, %65 in 1 : vector<8x28xf32>, vector<8x32xf32> -> vector<8x60xf32>
    %c0_40 = arith.constant 0 : index
    %c0_41 = arith.constant 0 : index
    %c0_42 = arith.constant 0 : index
    %c0_43 = arith.constant 0 : index
    %67 = vector.load %arg10[%c0_40, %c0_41, %c0_42, %c0_43] : memref<1x1x8x60xf32, #tpu.memory_space<vmem>>, vector<1x1x8x60xf32>
    %68 = vector.shape_cast %67 : vector<1x1x8x60xf32> to vector<8x60xf32>
    %69 = vector.shape_cast %66 : vector<8x60xf32> to vector<1x1x8x60xf32>
    tpu.vector_store %arg10[%c0_40, %c0_41, %c0_42, %c0_43], %69 {strides = array<i32>} : memref<1x1x8x60xf32, #tpu.memory_space<vmem>>, vector<1x1x8x60xf32>,
    return
  }
  func.func @transform_0(%arg0: i32, %arg1: i32) -> (i32, i32) {
    %c0_i32 = arith.constant 0 : i32
    %c0_i32_0 = arith.constant 0 : i32
    %c0_i32_1 = arith.constant 0 : i32
    return %c0_i32, %c0_i32_0 : i32, i32
  }
  func.func @transform_1(%arg0: i32, %arg1: i32) -> (i32, i32, i32, i32) {
    %c0_i32 = arith.constant 0 : i32
    %c0_i32_0 = arith.constant 0 : i32
    %c0_i32_1 = arith.constant 0 : i32
    return %arg0, %arg1, %c0_i32, %c0_i32_0 : i32, i32, i32, i32
  }
  func.func @transform_2(%arg0: i32, %arg1: i32) -> (i32, i32, i32, i32) {
    %c0_i32 = arith.constant 0 : i32
    %c0_i32_0 = arith.constant 0 : i32
    %c0_i32_1 = arith.constant 0 : i32
    return %arg0, %arg1, %c0_i32, %c0_i32_0 : i32, i32, i32, i32
  }
  func.func @transform_3(%arg0: i32, %arg1: i32) -> (i32, i32, i32, i32) {
    %c0_i32 = arith.constant 0 : i32
    %c0_i32_0 = arith.constant 0 : i32
    %c0_i32_1 = arith.constant 0 : i32
    return %arg0, %arg1, %c0_i32, %c0_i32_0 : i32, i32, i32, i32
  }
  func.func @transform_4(%arg0: i32, %arg1: i32) -> (i32, i32, i32, i32) {
    %c0_i32 = arith.constant 0 : i32
    %c0_i32_0 = arith.constant 0 : i32
    %c0_i32_1 = arith.constant 0 : i32
    return %arg0, %arg1, %c0_i32, %c0_i32_0 : i32, i32, i32, i32
  }
  func.func @transform_5(%arg0: i32, %arg1: i32) -> (i32, i32, i32, i32) {
    %c0_i32 = arith.constant 0 : i32
    %c0_i32_0 = arith.constant 0 : i32
    %c0_i32_1 = arith.constant 0 : i32
    return %arg0, %arg1, %c0_i32, %c0_i32_0 : i32, i32, i32, i32
  }
  func.func @transform_6(%arg0: i32, %arg1: i32) -> (i32, i32, i32) {
    %c0_i32 = arith.constant 0 : i32
    %c0_i32_0 = arith.constant 0 : i32
    %c0_i32_1 = arith.constant 0 : i32
    return %arg1, %c0_i32, %c0_i32_0 : i32, i32, i32
  }
  func.func @transform_7(%arg0: i32, %arg1: i32) -> (i32, i32, i32, i32) {
    %c0_i32 = arith.constant 0 : i32
    %c0_i32_0 = arith.constant 0 : i32
    %c0_i32_1 = arith.constant 0 : i32
    %c0_i32_2 = arith.constant 0 : i32
    return %arg0, %c0_i32, %c0_i32_0, %c0_i32_1 : i32, i32, i32, i32
  }
  func.func @transform_8(%arg0: i32, %arg1: i32) -> (i32, i32, i32, i32) {
    %c0_i32 = arith.constant 0 : i32
    %c0_i32_0 = arith.constant 0 : i32
    %c0_i32_1 = arith.constant 0 : i32
    return %arg0, %arg1, %c0_i32, %c0_i32_0 : i32, i32, i32, i32
  }
}

module attributes {stable_mosaic.version = 11 : i64} {
  func.func @_dense_kernel(%arg0: i32, %arg1: memref<16x512xbf16, #tpu.memory_space<vmem>>, %arg2: memref<512x32xbf16, #tpu.memory_space<vmem>>, %arg3: memref<1x32xf32, #tpu.memory_space<vmem>>, %arg4: memref<16x32xf32, #tpu.memory_space<vmem>>, %arg5: memref<16x32xf32, #tpu.memory_space<vmem>>) attributes {dimension_semantics = [#tpu.dimension_semantics<parallel>], iteration_bounds = array<i64: 1>, scalar_prefetch = 0 : i64, scratch_operands = 0 : i64, tpu.core_type = #tpu.core_type<tc>, window_params = [{transform_indices = @transform_0, window_bounds = array<i64: 16, 512>}, {pipeline_mode = #tpu.pipeline_mode<synchronous>, transform_indices = @transform_1, window_bounds = array<i64: 512, 32>}, {pipeline_mode = #tpu.pipeline_mode<synchronous>, transform_indices = @transform_2, window_bounds = array<i64: 1, 32>}, {transform_indices = @transform_3, window_bounds = array<i64: 16, 32>}, {transform_indices = @transform_4, window_bounds = array<i64: 16, 32>}]} {
    %c0 = arith.constant 0 : index
    %c0_0 = arith.constant 0 : index
    %0 = vector.load %arg1[%c0, %c0_0] : memref<16x512xbf16, #tpu.memory_space<vmem>>, vector<16x512xbf16>
    %c0_1 = arith.constant 0 : index
    %c0_2 = arith.constant 0 : index
    %1 = vector.load %arg2[%c0_1, %c0_2] : memref<512x32xbf16, #tpu.memory_space<vmem>>, vector<512x32xbf16>
    %cst = arith.constant dense<0.000000e+00> : vector<16x32xf32>
    %2 = tpu.matmul %0, %1, %cst {dimension_numbers = #tpu.dot_dimension_numbers<[1], [0], [0], [1], [0, 0, 1, 1], [], []>} : vector<16x512xbf16>, vector<512x32xbf16>, vector<16x32xf32> -> vector<16x32xf32>
    %c0_3 = arith.constant 0 : index
    %c0_4 = arith.constant 0 : index
    %3 = vector.load %arg3[%c0_3, %c0_4] : memref<1x32xf32, #tpu.memory_space<vmem>>, vector<1x32xf32>
    %4 = vector.broadcast %3 : vector<1x32xf32> to vector<16x32xf32>
    %5 = arith.addf %2, %4 : vector<16x32xf32>
    %c0_5 = arith.constant 0 : index
    %c0_6 = arith.constant 0 : index
    %6 = vector.load %arg4[%c0_5, %c0_6] : memref<16x32xf32, #tpu.memory_space<vmem>>, vector<16x32xf32>
    %7 = arith.addf %5, %6 : vector<16x32xf32>
    %c0_7 = arith.constant 0 : index
    %c0_8 = arith.constant 0 : index
    %8 = vector.load %arg5[%c0_7, %c0_8] : memref<16x32xf32, #tpu.memory_space<vmem>>, vector<16x32xf32>
    tpu.vector_store %arg5[%c0_7, %c0_8], %7 {strides = array<i32>} : memref<16x32xf32, #tpu.memory_space<vmem>>, vector<16x32xf32>,
    return
  }
  func.func @transform_0(%arg0: i32) -> (i32, i32) {
    %c0_i32 = arith.constant 0 : i32
    %c0_i32_0 = arith.constant 0 : i32
    return %arg0, %c0_i32 : i32, i32
  }
  func.func @transform_1(%arg0: i32) -> (i32, i32) {
    %c0_i32 = arith.constant 0 : i32
    %c0_i32_0 = arith.constant 0 : i32
    %c0_i32_1 = arith.constant 0 : i32
    return %c0_i32, %c0_i32_0 : i32, i32
  }
  func.func @transform_2(%arg0: i32) -> (i32, i32) {
    %c0_i32 = arith.constant 0 : i32
    %c0_i32_0 = arith.constant 0 : i32
    %c0_i32_1 = arith.constant 0 : i32
    return %c0_i32, %c0_i32_0 : i32, i32
  }
  func.func @transform_3(%arg0: i32) -> (i32, i32) {
    %c0_i32 = arith.constant 0 : i32
    %c0_i32_0 = arith.constant 0 : i32
    return %arg0, %c0_i32 : i32, i32
  }
  func.func @transform_4(%arg0: i32) -> (i32, i32) {
    %c0_i32 = arith.constant 0 : i32
    %c0_i32_0 = arith.constant 0 : i32
    return %arg0, %c0_i32 : i32, i32
  }
}

module attributes {stable_mosaic.version = 11 : i64} {
  func.func @_ln_dense_kernel(%arg0: i32, %arg1: memref<16x32xf32, #tpu.memory_space<vmem>>, %arg2: memref<1x32xf32, #tpu.memory_space<vmem>>, %arg3: memref<1x32xf32, #tpu.memory_space<vmem>>, %arg4: memref<32x32xbf16, #tpu.memory_space<vmem>>, %arg5: memref<1x32xf32, #tpu.memory_space<vmem>>, %arg6: memref<16x32xf32, #tpu.memory_space<vmem>>, %arg7: memref<16x32xf32, #tpu.memory_space<vmem>>) attributes {dimension_semantics = [#tpu.dimension_semantics<parallel>], iteration_bounds = array<i64: 1>, scalar_prefetch = 0 : i64, scratch_operands = 0 : i64, tpu.core_type = #tpu.core_type<tc>, window_params = [{transform_indices = @transform_0, window_bounds = array<i64: 16, 32>}, {pipeline_mode = #tpu.pipeline_mode<synchronous>, transform_indices = @transform_1, window_bounds = array<i64: 1, 32>}, {pipeline_mode = #tpu.pipeline_mode<synchronous>, transform_indices = @transform_2, window_bounds = array<i64: 1, 32>}, {pipeline_mode = #tpu.pipeline_mode<synchronous>, transform_indices = @transform_3, window_bounds = array<i64: 32, 32>}, {pipeline_mode = #tpu.pipeline_mode<synchronous>, transform_indices = @transform_4, window_bounds = array<i64: 1, 32>}, {transform_indices = @transform_5, window_bounds = array<i64: 16, 32>}, {transform_indices = @transform_6, window_bounds = array<i64: 16, 32>}]} {
    %c0 = arith.constant 0 : index
    %c0_0 = arith.constant 0 : index
    %0 = vector.load %arg1[%c0, %c0_0] : memref<16x32xf32, #tpu.memory_space<vmem>>, vector<16x32xf32>
    %cst = arith.constant dense<0.000000e+00> : vector<16xf32>
    %1 = vector.multi_reduction <add>, %0, %cst [1] : vector<16x32xf32> to vector<16xf32>
    %2 = vector.shape_cast %1 : vector<16xf32> to vector<16x1xf32>
    %cst_1 = arith.constant 3.200000e+01 : f32
    %3 = vector.broadcast %cst_1 : f32 to vector<16x1xf32>
    %4 = arith.divf %2, %3 : vector<16x1xf32>
    %5 = vector.broadcast %4 : vector<16x1xf32> to vector<16x32xf32>
    %6 = arith.subf %0, %5 : vector<16x32xf32>
    %7 = arith.mulf %6, %6 : vector<16x32xf32>
    %cst_2 = arith.constant dense<0.000000e+00> : vector<16xf32>
    %8 = vector.multi_reduction <add>, %7, %cst_2 [1] : vector<16x32xf32> to vector<16xf32>
    %9 = vector.shape_cast %8 : vector<16xf32> to vector<16x1xf32>
    %cst_3 = arith.constant 3.200000e+01 : f32
    %10 = vector.broadcast %cst_3 : f32 to vector<16x1xf32>
    %11 = arith.divf %9, %10 : vector<16x1xf32>
    %cst_4 = arith.constant 9.99999974E-6 : f32
    %12 = vector.broadcast %cst_4 : f32 to vector<16x1xf32>
    %13 = arith.addf %11, %12 : vector<16x1xf32>
    %14 = math.rsqrt %13 : vector<16x1xf32>
    %15 = vector.broadcast %14 : vector<16x1xf32> to vector<16x32xf32>
    %16 = arith.mulf %6, %15 : vector<16x32xf32>
    %c0_5 = arith.constant 0 : index
    %c0_6 = arith.constant 0 : index
    %17 = vector.load %arg2[%c0_5, %c0_6] : memref<1x32xf32, #tpu.memory_space<vmem>>, vector<1x32xf32>
    %18 = vector.broadcast %17 : vector<1x32xf32> to vector<16x32xf32>
    %19 = arith.mulf %16, %18 : vector<16x32xf32>
    %c0_7 = arith.constant 0 : index
    %c0_8 = arith.constant 0 : index
    %20 = vector.load %arg3[%c0_7, %c0_8] : memref<1x32xf32, #tpu.memory_space<vmem>>, vector<1x32xf32>
    %21 = vector.broadcast %20 : vector<1x32xf32> to vector<16x32xf32>
    %22 = arith.addf %19, %21 : vector<16x32xf32>
    %c0_9 = arith.constant 0 : index
    %c0_10 = arith.constant 0 : index
    %23 = vector.load %arg6[%c0_9, %c0_10] : memref<16x32xf32, #tpu.memory_space<vmem>>, vector<16x32xf32>
    tpu.vector_store %arg6[%c0_9, %c0_10], %22 {strides = array<i32>} : memref<16x32xf32, #tpu.memory_space<vmem>>, vector<16x32xf32>,
    %24 = arith.truncf %22 : vector<16x32xf32> to vector<16x32xbf16>
    %c0_11 = arith.constant 0 : index
    %c0_12 = arith.constant 0 : index
    %25 = vector.load %arg4[%c0_11, %c0_12] : memref<32x32xbf16, #tpu.memory_space<vmem>>, vector<32x32xbf16>
    %cst_13 = arith.constant dense<0.000000e+00> : vector<16x32xf32>
    %26 = tpu.matmul %24, %25, %cst_13 {dimension_numbers = #tpu.dot_dimension_numbers<[1], [0], [0], [1], [0, 0, 1, 1], [], []>} : vector<16x32xbf16>, vector<32x32xbf16>, vector<16x32xf32> -> vector<16x32xf32>
    %c0_14 = arith.constant 0 : index
    %c0_15 = arith.constant 0 : index
    %27 = vector.load %arg5[%c0_14, %c0_15] : memref<1x32xf32, #tpu.memory_space<vmem>>, vector<1x32xf32>
    %28 = vector.broadcast %27 : vector<1x32xf32> to vector<16x32xf32>
    %29 = arith.addf %26, %28 : vector<16x32xf32>
    %cst_16 = arith.constant 0.000000e+00 : f32
    %30 = vector.broadcast %cst_16 : f32 to vector<16x32xf32>
    %31 = arith.maximumf %29, %30 : vector<16x32xf32>
    %c0_17 = arith.constant 0 : index
    %c0_18 = arith.constant 0 : index
    %32 = vector.load %arg7[%c0_17, %c0_18] : memref<16x32xf32, #tpu.memory_space<vmem>>, vector<16x32xf32>
    tpu.vector_store %arg7[%c0_17, %c0_18], %31 {strides = array<i32>} : memref<16x32xf32, #tpu.memory_space<vmem>>, vector<16x32xf32>,
    return
  }
  func.func @transform_0(%arg0: i32) -> (i32, i32) {
    %c0_i32 = arith.constant 0 : i32
    %c0_i32_0 = arith.constant 0 : i32
    return %arg0, %c0_i32 : i32, i32
  }
  func.func @transform_1(%arg0: i32) -> (i32, i32) {
    %c0_i32 = arith.constant 0 : i32
    %c0_i32_0 = arith.constant 0 : i32
    %c0_i32_1 = arith.constant 0 : i32
    return %c0_i32, %c0_i32_0 : i32, i32
  }
  func.func @transform_2(%arg0: i32) -> (i32, i32) {
    %c0_i32 = arith.constant 0 : i32
    %c0_i32_0 = arith.constant 0 : i32
    %c0_i32_1 = arith.constant 0 : i32
    return %c0_i32, %c0_i32_0 : i32, i32
  }
  func.func @transform_3(%arg0: i32) -> (i32, i32) {
    %c0_i32 = arith.constant 0 : i32
    %c0_i32_0 = arith.constant 0 : i32
    %c0_i32_1 = arith.constant 0 : i32
    return %c0_i32, %c0_i32_0 : i32, i32
  }
  func.func @transform_4(%arg0: i32) -> (i32, i32) {
    %c0_i32 = arith.constant 0 : i32
    %c0_i32_0 = arith.constant 0 : i32
    %c0_i32_1 = arith.constant 0 : i32
    return %c0_i32, %c0_i32_0 : i32, i32
  }
  func.func @transform_5(%arg0: i32) -> (i32, i32) {
    %c0_i32 = arith.constant 0 : i32
    %c0_i32_0 = arith.constant 0 : i32
    return %arg0, %c0_i32 : i32, i32
  }
  func.func @transform_6(%arg0: i32) -> (i32, i32) {
    %c0_i32 = arith.constant 0 : i32
    %c0_i32_0 = arith.constant 0 : i32
    return %arg0, %c0_i32 : i32, i32
  }
}

module attributes {stable_mosaic.version = 11 : i64} {
  func.func @_ff_tail_kernel(%arg0: i32, %arg1: memref<16x32xf32, #tpu.memory_space<vmem>>, %arg2: memref<32x32xbf16, #tpu.memory_space<vmem>>, %arg3: memref<1x32xf32, #tpu.memory_space<vmem>>, %arg4: memref<32x32xbf16, #tpu.memory_space<vmem>>, %arg5: memref<1x32xf32, #tpu.memory_space<vmem>>, %arg6: memref<16x32xf32, #tpu.memory_space<vmem>>, %arg7: memref<1x32xf32, #tpu.memory_space<vmem>>, %arg8: memref<1x32xf32, #tpu.memory_space<vmem>>, %arg9: memref<16x32xf32, #tpu.memory_space<vmem>>) attributes {dimension_semantics = [#tpu.dimension_semantics<parallel>], iteration_bounds = array<i64: 1>, scalar_prefetch = 0 : i64, scratch_operands = 0 : i64, tpu.core_type = #tpu.core_type<tc>, window_params = [{transform_indices = @transform_0, window_bounds = array<i64: 16, 32>}, {pipeline_mode = #tpu.pipeline_mode<synchronous>, transform_indices = @transform_1, window_bounds = array<i64: 32, 32>}, {pipeline_mode = #tpu.pipeline_mode<synchronous>, transform_indices = @transform_2, window_bounds = array<i64: 1, 32>}, {pipeline_mode = #tpu.pipeline_mode<synchronous>, transform_indices = @transform_3, window_bounds = array<i64: 32, 32>}, {pipeline_mode = #tpu.pipeline_mode<synchronous>, transform_indices = @transform_4, window_bounds = array<i64: 1, 32>}, {transform_indices = @transform_5, window_bounds = array<i64: 16, 32>}, {pipeline_mode = #tpu.pipeline_mode<synchronous>, transform_indices = @transform_6, window_bounds = array<i64: 1, 32>}, {pipeline_mode = #tpu.pipeline_mode<synchronous>, transform_indices = @transform_7, window_bounds = array<i64: 1, 32>}, {transform_indices = @transform_8, window_bounds = array<i64: 16, 32>}]} {
    %c0 = arith.constant 0 : index
    %c0_0 = arith.constant 0 : index
    %0 = vector.load %arg1[%c0, %c0_0] : memref<16x32xf32, #tpu.memory_space<vmem>>, vector<16x32xf32>
    %1 = arith.truncf %0 : vector<16x32xf32> to vector<16x32xbf16>
    %c0_1 = arith.constant 0 : index
    %c0_2 = arith.constant 0 : index
    %2 = vector.load %arg2[%c0_1, %c0_2] : memref<32x32xbf16, #tpu.memory_space<vmem>>, vector<32x32xbf16>
    %cst = arith.constant dense<0.000000e+00> : vector<16x32xf32>
    %3 = tpu.matmul %1, %2, %cst {dimension_numbers = #tpu.dot_dimension_numbers<[1], [0], [0], [1], [0, 0, 1, 1], [], []>} : vector<16x32xbf16>, vector<32x32xbf16>, vector<16x32xf32> -> vector<16x32xf32>
    %c0_3 = arith.constant 0 : index
    %c0_4 = arith.constant 0 : index
    %4 = vector.load %arg3[%c0_3, %c0_4] : memref<1x32xf32, #tpu.memory_space<vmem>>, vector<1x32xf32>
    %5 = vector.broadcast %4 : vector<1x32xf32> to vector<16x32xf32>
    %6 = arith.addf %3, %5 : vector<16x32xf32>
    %cst_5 = arith.constant 0.000000e+00 : f32
    %7 = vector.broadcast %cst_5 : f32 to vector<16x32xf32>
    %8 = arith.maximumf %6, %7 : vector<16x32xf32>
    %9 = arith.truncf %8 : vector<16x32xf32> to vector<16x32xbf16>
    %c0_6 = arith.constant 0 : index
    %c0_7 = arith.constant 0 : index
    %10 = vector.load %arg4[%c0_6, %c0_7] : memref<32x32xbf16, #tpu.memory_space<vmem>>, vector<32x32xbf16>
    %cst_8 = arith.constant dense<0.000000e+00> : vector<16x32xf32>
    %11 = tpu.matmul %9, %10, %cst_8 {dimension_numbers = #tpu.dot_dimension_numbers<[1], [0], [0], [1], [0, 0, 1, 1], [], []>} : vector<16x32xbf16>, vector<32x32xbf16>, vector<16x32xf32> -> vector<16x32xf32>
    %c0_9 = arith.constant 0 : index
    %c0_10 = arith.constant 0 : index
    %12 = vector.load %arg5[%c0_9, %c0_10] : memref<1x32xf32, #tpu.memory_space<vmem>>, vector<1x32xf32>
    %13 = vector.broadcast %12 : vector<1x32xf32> to vector<16x32xf32>
    %14 = arith.addf %11, %13 : vector<16x32xf32>
    %c0_11 = arith.constant 0 : index
    %c0_12 = arith.constant 0 : index
    %15 = vector.load %arg6[%c0_11, %c0_12] : memref<16x32xf32, #tpu.memory_space<vmem>>, vector<16x32xf32>
    %16 = arith.addf %14, %15 : vector<16x32xf32>
    %cst_13 = arith.constant dense<0.000000e+00> : vector<16xf32>
    %17 = vector.multi_reduction <add>, %16, %cst_13 [1] : vector<16x32xf32> to vector<16xf32>
    %18 = vector.shape_cast %17 : vector<16xf32> to vector<16x1xf32>
    %cst_14 = arith.constant 3.200000e+01 : f32
    %19 = vector.broadcast %cst_14 : f32 to vector<16x1xf32>
    %20 = arith.divf %18, %19 : vector<16x1xf32>
    %21 = vector.broadcast %20 : vector<16x1xf32> to vector<16x32xf32>
    %22 = arith.subf %16, %21 : vector<16x32xf32>
    %23 = arith.mulf %22, %22 : vector<16x32xf32>
    %cst_15 = arith.constant dense<0.000000e+00> : vector<16xf32>
    %24 = vector.multi_reduction <add>, %23, %cst_15 [1] : vector<16x32xf32> to vector<16xf32>
    %25 = vector.shape_cast %24 : vector<16xf32> to vector<16x1xf32>
    %cst_16 = arith.constant 3.200000e+01 : f32
    %26 = vector.broadcast %cst_16 : f32 to vector<16x1xf32>
    %27 = arith.divf %25, %26 : vector<16x1xf32>
    %cst_17 = arith.constant 9.99999974E-6 : f32
    %28 = vector.broadcast %cst_17 : f32 to vector<16x1xf32>
    %29 = arith.addf %27, %28 : vector<16x1xf32>
    %30 = math.rsqrt %29 : vector<16x1xf32>
    %31 = vector.broadcast %30 : vector<16x1xf32> to vector<16x32xf32>
    %32 = arith.mulf %22, %31 : vector<16x32xf32>
    %c0_18 = arith.constant 0 : index
    %c0_19 = arith.constant 0 : index
    %33 = vector.load %arg7[%c0_18, %c0_19] : memref<1x32xf32, #tpu.memory_space<vmem>>, vector<1x32xf32>
    %34 = vector.broadcast %33 : vector<1x32xf32> to vector<16x32xf32>
    %35 = arith.mulf %32, %34 : vector<16x32xf32>
    %c0_20 = arith.constant 0 : index
    %c0_21 = arith.constant 0 : index
    %36 = vector.load %arg8[%c0_20, %c0_21] : memref<1x32xf32, #tpu.memory_space<vmem>>, vector<1x32xf32>
    %37 = vector.broadcast %36 : vector<1x32xf32> to vector<16x32xf32>
    %38 = arith.addf %35, %37 : vector<16x32xf32>
    %c0_22 = arith.constant 0 : index
    %c0_23 = arith.constant 0 : index
    %39 = vector.load %arg9[%c0_22, %c0_23] : memref<16x32xf32, #tpu.memory_space<vmem>>, vector<16x32xf32>
    tpu.vector_store %arg9[%c0_22, %c0_23], %38 {strides = array<i32>} : memref<16x32xf32, #tpu.memory_space<vmem>>, vector<16x32xf32>,
    return
  }
  func.func @transform_0(%arg0: i32) -> (i32, i32) {
    %c0_i32 = arith.constant 0 : i32
    %c0_i32_0 = arith.constant 0 : i32
    return %arg0, %c0_i32 : i32, i32
  }
  func.func @transform_1(%arg0: i32) -> (i32, i32) {
    %c0_i32 = arith.constant 0 : i32
    %c0_i32_0 = arith.constant 0 : i32
    %c0_i32_1 = arith.constant 0 : i32
    return %c0_i32, %c0_i32_0 : i32, i32
  }
  func.func @transform_2(%arg0: i32) -> (i32, i32) {
    %c0_i32 = arith.constant 0 : i32
    %c0_i32_0 = arith.constant 0 : i32
    %c0_i32_1 = arith.constant 0 : i32
    return %c0_i32, %c0_i32_0 : i32, i32
  }
  func.func @transform_3(%arg0: i32) -> (i32, i32) {
    %c0_i32 = arith.constant 0 : i32
    %c0_i32_0 = arith.constant 0 : i32
    %c0_i32_1 = arith.constant 0 : i32
    return %c0_i32, %c0_i32_0 : i32, i32
  }
  func.func @transform_4(%arg0: i32) -> (i32, i32) {
    %c0_i32 = arith.constant 0 : i32
    %c0_i32_0 = arith.constant 0 : i32
    %c0_i32_1 = arith.constant 0 : i32
    return %c0_i32, %c0_i32_0 : i32, i32
  }
  func.func @transform_5(%arg0: i32) -> (i32, i32) {
    %c0_i32 = arith.constant 0 : i32
    %c0_i32_0 = arith.constant 0 : i32
    return %arg0, %c0_i32 : i32, i32
  }
  func.func @transform_6(%arg0: i32) -> (i32, i32) {
    %c0_i32 = arith.constant 0 : i32
    %c0_i32_0 = arith.constant 0 : i32
    %c0_i32_1 = arith.constant 0 : i32
    return %c0_i32, %c0_i32_0 : i32, i32
  }
  func.func @transform_7(%arg0: i32) -> (i32, i32) {
    %c0_i32 = arith.constant 0 : i32
    %c0_i32_0 = arith.constant 0 : i32
    %c0_i32_1 = arith.constant 0 : i32
    return %c0_i32, %c0_i32_0 : i32, i32
  }
  func.func @transform_8(%arg0: i32) -> (i32, i32) {
    %c0_i32 = arith.constant 0 : i32
    %c0_i32_0 = arith.constant 0 : i32
    return %arg0, %c0_i32 : i32, i32
  }
}

module attributes {stable_mosaic.version = 11 : i64} {
  func.func @_dense_kernel(%arg0: i32, %arg1: memref<16x32xbf16, #tpu.memory_space<vmem>>, %arg2: memref<32x6xbf16, #tpu.memory_space<vmem>>, %arg3: memref<1x6xf32, #tpu.memory_space<vmem>>, %arg4: memref<16x6xf32, #tpu.memory_space<vmem>>) attributes {dimension_semantics = [#tpu.dimension_semantics<parallel>], iteration_bounds = array<i64: 1>, scalar_prefetch = 0 : i64, scratch_operands = 0 : i64, tpu.core_type = #tpu.core_type<tc>, window_params = [{transform_indices = @transform_0, window_bounds = array<i64: 16, 32>}, {pipeline_mode = #tpu.pipeline_mode<synchronous>, transform_indices = @transform_1, window_bounds = array<i64: 32, 6>}, {pipeline_mode = #tpu.pipeline_mode<synchronous>, transform_indices = @transform_2, window_bounds = array<i64: 1, 6>}, {transform_indices = @transform_3, window_bounds = array<i64: 16, 6>}]} {
    %c0 = arith.constant 0 : index
    %c0_0 = arith.constant 0 : index
    %0 = vector.load %arg1[%c0, %c0_0] : memref<16x32xbf16, #tpu.memory_space<vmem>>, vector<16x32xbf16>
    %c0_1 = arith.constant 0 : index
    %c0_2 = arith.constant 0 : index
    %1 = vector.load %arg2[%c0_1, %c0_2] : memref<32x6xbf16, #tpu.memory_space<vmem>>, vector<32x6xbf16>
    %cst = arith.constant dense<0.000000e+00> : vector<16x6xf32>
    %2 = tpu.matmul %0, %1, %cst {dimension_numbers = #tpu.dot_dimension_numbers<[1], [0], [0], [1], [0, 0, 1, 1], [], []>} : vector<16x32xbf16>, vector<32x6xbf16>, vector<16x6xf32> -> vector<16x6xf32>
    %c0_3 = arith.constant 0 : index
    %c0_4 = arith.constant 0 : index
    %3 = vector.load %arg3[%c0_3, %c0_4] : memref<1x6xf32, #tpu.memory_space<vmem>>, vector<1x6xf32>
    %4 = vector.broadcast %3 : vector<1x6xf32> to vector<16x6xf32>
    %5 = arith.addf %2, %4 : vector<16x6xf32>
    %c0_5 = arith.constant 0 : index
    %c0_6 = arith.constant 0 : index
    %6 = vector.load %arg4[%c0_5, %c0_6] : memref<16x6xf32, #tpu.memory_space<vmem>>, vector<16x6xf32>
    tpu.vector_store %arg4[%c0_5, %c0_6], %5 {strides = array<i32>} : memref<16x6xf32, #tpu.memory_space<vmem>>, vector<16x6xf32>,
    return
  }
  func.func @transform_0(%arg0: i32) -> (i32, i32) {
    %c0_i32 = arith.constant 0 : i32
    %c0_i32_0 = arith.constant 0 : i32
    return %arg0, %c0_i32 : i32, i32
  }
  func.func @transform_1(%arg0: i32) -> (i32, i32) {
    %c0_i32 = arith.constant 0 : i32
    %c0_i32_0 = arith.constant 0 : i32
    %c0_i32_1 = arith.constant 0 : i32
    return %c0_i32, %c0_i32_0 : i32, i32
  }
  func.func @transform_2(%arg0: i32) -> (i32, i32) {
    %c0_i32 = arith.constant 0 : i32
    %c0_i32_0 = arith.constant 0 : i32
    %c0_i32_1 = arith.constant 0 : i32
    return %c0_i32, %c0_i32_0 : i32, i32
  }
  func.func @transform_3(%arg0: i32) -> (i32, i32) {
    %c0_i32 = arith.constant 0 : i32
    %c0_i32_0 = arith.constant 0 : i32
    return %arg0, %c0_i32 : i32, i32
  }
}

module attributes {stable_mosaic.version = 11 : i64} {
  func.func @_dense_kernel(%arg0: i32, %arg1: memref<16x32xbf16, #tpu.memory_space<vmem>>, %arg2: memref<32x3xbf16, #tpu.memory_space<vmem>>, %arg3: memref<1x3xf32, #tpu.memory_space<vmem>>, %arg4: memref<16x3xf32, #tpu.memory_space<vmem>>) attributes {dimension_semantics = [#tpu.dimension_semantics<parallel>], iteration_bounds = array<i64: 1>, scalar_prefetch = 0 : i64, scratch_operands = 0 : i64, tpu.core_type = #tpu.core_type<tc>, window_params = [{transform_indices = @transform_0, window_bounds = array<i64: 16, 32>}, {pipeline_mode = #tpu.pipeline_mode<synchronous>, transform_indices = @transform_1, window_bounds = array<i64: 32, 3>}, {pipeline_mode = #tpu.pipeline_mode<synchronous>, transform_indices = @transform_2, window_bounds = array<i64: 1, 3>}, {transform_indices = @transform_3, window_bounds = array<i64: 16, 3>}]} {
    %c0 = arith.constant 0 : index
    %c0_0 = arith.constant 0 : index
    %0 = vector.load %arg1[%c0, %c0_0] : memref<16x32xbf16, #tpu.memory_space<vmem>>, vector<16x32xbf16>
    %c0_1 = arith.constant 0 : index
    %c0_2 = arith.constant 0 : index
    %1 = vector.load %arg2[%c0_1, %c0_2] : memref<32x3xbf16, #tpu.memory_space<vmem>>, vector<32x3xbf16>
    %cst = arith.constant dense<0.000000e+00> : vector<16x3xf32>
    %2 = tpu.matmul %0, %1, %cst {dimension_numbers = #tpu.dot_dimension_numbers<[1], [0], [0], [1], [0, 0, 1, 1], [], []>} : vector<16x32xbf16>, vector<32x3xbf16>, vector<16x3xf32> -> vector<16x3xf32>
    %c0_3 = arith.constant 0 : index
    %c0_4 = arith.constant 0 : index
    %3 = vector.load %arg3[%c0_3, %c0_4] : memref<1x3xf32, #tpu.memory_space<vmem>>, vector<1x3xf32>
    %4 = vector.broadcast %3 : vector<1x3xf32> to vector<16x3xf32>
    %5 = arith.addf %2, %4 : vector<16x3xf32>
    %c0_5 = arith.constant 0 : index
    %c0_6 = arith.constant 0 : index
    %6 = vector.load %arg4[%c0_5, %c0_6] : memref<16x3xf32, #tpu.memory_space<vmem>>, vector<16x3xf32>
    tpu.vector_store %arg4[%c0_5, %c0_6], %5 {strides = array<i32>} : memref<16x3xf32, #tpu.memory_space<vmem>>, vector<16x3xf32>,
    return
  }
  func.func @transform_0(%arg0: i32) -> (i32, i32) {
    %c0_i32 = arith.constant 0 : i32
    %c0_i32_0 = arith.constant 0 : i32
    return %arg0, %c0_i32 : i32, i32
  }
  func.func @transform_1(%arg0: i32) -> (i32, i32) {
    %c0_i32 = arith.constant 0 : i32
    %c0_i32_0 = arith.constant 0 : i32
    %c0_i32_1 = arith.constant 0 : i32
    return %c0_i32, %c0_i32_0 : i32, i32
  }
  func.func @transform_2(%arg0: i32) -> (i32, i32) {
    %c0_i32 = arith.constant 0 : i32
    %c0_i32_0 = arith.constant 0 : i32
    %c0_i32_1 = arith.constant 0 : i32
    return %c0_i32, %c0_i32_0 : i32, i32
  }
  func.func @transform_3(%arg0: i32) -> (i32, i32) {
    %c0_i32 = arith.constant 0 : i32
    %c0_i32_0 = arith.constant 0 : i32
    return %arg0, %c0_i32 : i32, i32
  }
}

</mosaic_0001>

<bundles_post_ra>
// kernel: predict_structure.14
= control target key start
LH: loop header
LB: loop body
LE: loop exit
PB: predicated region body
PF: predicated region fallthrough
CT: control target
= control target key end

     0   :  { %v311_v1 = vmov 0   ;;  %vm126_vm0 = vcmask 261120   ;;  %v31_v14 = vlaneseq  ;;  %s415_s1 = inlined_call_operand.vmem [shape: bf16[32,672], index: 1, kind: input, shape index: {}]   ;;  %s416_s0 = inlined_call_operand.vmem [shape: bf16[16,32], index: 0, kind: input, shape index: {}]   ;;  %s417_s2 = inlined_call_operand.vmem [shape: f32[1,672], index: 2, kind: input, shape index: {}]   ;;  %s418_s3 = inlined_call_operand.vmem [shape: f32[16,672], index: 3, kind: output, shape index: {}]  }
   0x1   :  { %v292_v0 = vld [vmem:[%s415_s1 + $0x4] ss:$24 sps:$4 sm:$0xff]   ;;  %162 = vmatprep.mubr.bf16.mxu0 %v311_v1  ;;  %205 = vmatprep.mubr.bf16.mxu1 %v311_v1  ;;  %v294_v2 = vld [vmem:[%s415_s1] ss:$24 sps:$4 sm:$0xff]   ;;  %v295_v3 = vld [vmem:[%s415_s1 + $0x34] ss:$24 sps:$4 sm:$0xff]  }
   0x2   :  { %130 = vmatprep.subr.bf16.mxu0 %v292_v0  ;;  %v297_v4 = vld [vmem:[%s415_s1 + $0x30] ss:$24 sps:$4 sm:$0xff]   ;;  %v298_v5 = vld [vmem:[%s415_s1 + $0xc] ss:$24 sps:$4 sm:$0xff]   ;;  %v305_v10 = vld [vmem:[%s415_s1 + $0x3c] ss:$24 sps:$4 sm:$0xff]  }
   0x3   :  { %131 = vmatpush1.bf16.msra.mxu0 %v294_v2  ;;  %v300_v6 = vld [vmem:[%s415_s1 + $0x8] ss:$24 sps:$4 sm:$0xff]   ;;  %173 = vmatprep.subr.bf16.mxu1 %v298_v5  ;;  %v304_v9 = vld [vmem:[%s415_s1 + $0x14] ss:$24 sps:$4 sm:$0xff]   ;;  %v307_v11 = vld [vmem:[%s415_s1 + $0x38] ss:$24 sps:$4 sm:$0xff]  }
   0x4   :  { %132 = vmatprep.subr.bf16.mxu0 %v295_v3  ;;  %v301_v7 = vld [vmem:[%s416_s0] sm:$0xff]   ;;  %v302_v8 = vld [vmem:[%s415_s1 + $0x10] ss:$24 sps:$4 sm:$0xff]   ;;  %174 = vmatpush1.bf16.msra.mxu1 %v300_v6  ;;  %v32_v15 = vshrl.u32 %v31_v14, 7 }
   0x5   :  { %v310_v12 = vld [vmem:[%s415_s1 + $0x44] ss:$24 sps:$4 sm:$0xff]   ;;  %175 = vmatprep.subr.bf16.mxu1 %v305_v10  ;;  %v308_v13 = vld [vmem:[%s415_s1 + $0x40] ss:$24 sps:$4 sm:$0xff]  }
   0x6   :  { %v33_v16 = vsub.s32 0, %v32_v15  ;;  %v29_v17 = vld [vmem:[%s417_s2] sm:$0x3f]  ;;  %v37_v18 = vsub.s32 1, %v32_v15  ;;  %v41_v19 = vsub.s32 2, %v32_v15  ;;  %v45_v21 = vsub.s32 3, %v32_v15 }
   0x7   :  { %133 = vmatpush1.bf16.msra.mxu0 %v297_v4  ;;  %v49_v28 = vsub.s32 4, %v32_v15  ;;  %v53_v31 = vsub.s32 5, %v32_v15 }
   0x8   :  { %216 = vmatprep.subr.bf16.mxu0 %v304_v9  ;;  %176 = vmatpush1.bf16.msra.mxu1 %v307_v11  ;;  %v34_v20 = vrot.slane %v29_v17, %v33_v16  ;;  %v38_v22 = vrot.slane %v29_v17, %v37_v18  ;;  %v42_v24 = vrot.slane %v29_v17, %v41_v19 }
   0x9   :  { %v46_v27 = vrot.slane %v29_v17, %v45_v21  ;;  %v50_v40 = vrot.slane %v29_v17, %v49_v28  ;;  %v54_v43 = vrot.slane %v29_v17, %v53_v31 }
   0xa   :  { %288 = vmatmul.mubr.msk.bf16.vlgmr.msra.gmra.mrb[0].mxu0 %vm126_vm0, %v301_v7 }
   0xb   :  { %217 = vmatpush1.bf16.msra.mxu0 %v302_v8  ;;  %248 = vmatprep.mubr.bf16.mxu0 %v311_v1 }
   0xc   :  { %218 = vmatprep.subr.bf16.mxu0 %v310_v12  ;;  %289 = vmatmul.mubr.msk.bf16.vlgmr.msra.gmra.mrb[0].mxu1 %vm126_vm0, %v301_v7 }
   0xf   :  { %219 = vmatpush1.bf16.msra.mxu0 %v308_v13 }
  0x12   :  { %290 = vmatmul.mubr.msk.bf16.vlgmr.msra.gmra.mrb[4].mxu0 %vm126_vm0, %v301_v7 }
  0xdd   :  { %v164_v23 = vpop.f32.mrb[0].mxu0 }
  0xde   :  { %v165_v25 = vadd.f32 %v164_v23, %v34_v20  ;;  %v166_v26 = vpop.f32.mrb[1].mxu0 }
  0xdf   :  { %v167_v29 = vadd.f32 %v166_v26, %v38_v22  ;;  %v168_v30 = vpop.f32.mrb[2].mxu0  ;;  %v207_v34 = vpop.f32.mrb[0].mxu1 }
  0xe0   :  { %259 = vst [vmem:[%s418_s3] sm:$0xff] %v165_v25  ;;  %v169_v32 = vadd.f32 %v168_v30, %v34_v20  ;;  %v170_v33 = vpop.f32.mrb[3].mxu0  ;;  %v208_v36 = vadd.f32 %v207_v34, %v42_v24  ;;  %v209_v37 = vpop.f32.mrb[1].mxu1 }
  0xe1   :  { %260 = vst [vmem:[%s418_s3 + $0x8] sm:$0xff] %v167_v29  ;;  %v171_v35 = vadd.f32 %v170_v33, %v38_v22  ;;  %v210_v38 = vadd.f32 %v209_v37, %v46_v27  ;;  %v211_v39 = vpop.f32.mrb[2].mxu1 }
  0xe2   :  { %265 = vst [vmem:[%s418_s3 + $0x30] sm:$0xff] %v169_v32  ;;  %261 = vst [vmem:[%s418_s3 + $0x10] sm:$0xff] %v208_v36  ;;  %v212_v41 = vadd.f32 %v211_v39, %v42_v24  ;;  %v213_v42 = vpop.f32.mrb[3].mxu1 }
  0xe3   :  { %266 = vst [vmem:[%s418_s3 + $0x38] sm:$0xff] %v171_v35  ;;  %262 = vst [vmem:[%s418_s3 + $0x18] sm:$0xff] %v210_v38  ;;  %v214_v44 = vadd.f32 %v213_v42, %v46_v27 }
  0xe4   :  { %267 = vst [vmem:[%s418_s3 + $0x40] sm:$0xff] %v212_v41 }
  0xe5   :  { %v250_v45 = vpop.f32.mrb[4].mxu0  ;;  %268 = vst [vmem:[%s418_s3 + $0x48] sm:$0xff] %v214_v44 }
  0xe6   :  { %v251_v46 = vadd.f32 %v250_v45, %v50_v40  ;;  %v252_v47 = vpop.f32.mrb[5].mxu0 }
  0xe7   :  { %v253_v48 = vadd.f32 %v252_v47, %v54_v43  ;;  %v254_v49 = vpop.f32.mrb[6].mxu0 }
  0xe8   :  { %263 = vst [vmem:[%s418_s3 + $0x20] sm:$0xff] %v251_v46  ;;  %v255_v50 = vadd.f32 %v254_v49, %v50_v40  ;;  %v256_v51 = vpop.f32.mrb[7].mxu0 }
  0xe9   :  { %264 = vst.msk [vmem:[%s418_s3 + $0x28] sm:$0xff] %vm126_vm0, %v253_v48  ;;  %v257_v52 = vadd.f32 %v256_v51, %v54_v43 }
  0xea   :  { %269 = vst [vmem:[%s418_s3 + $0x50] sm:$0xff] %v255_v50 }
  0xeb   :  { %270 = vst.msk [vmem:[%s418_s3 + $0x58] sm:$0xff] %vm126_vm0, %v257_v52 }

// kernel: predict_structure.15
= control target key start
LH: loop header
LB: loop body
LE: loop exit
PB: predicated region body
PF: predicated region fallthrough
CT: control target
= control target key end

     0   :  { %s2742_s0 = inlined_call_operand.hbm [shape: f32[2,8], index: 0, kind: input, shape index: {}]   ;;  %s2743_s1 = inlined_call_operand.hbm [shape: bf16[2,8,8,16], index: 1, kind: input, shape index: {}]   ;;  %s2744_s2 = inlined_call_operand.hbm [shape: bf16[2,8,8,16], index: 2, kind: input, shape index: {}]   ;;  %s2745_s3 = inlined_call_operand.hbm [shape: f32[2,8,8,12], index: 3, kind: input, shape index: {}]   ;;  %s2746_s4 = inlined_call_operand.hbm [shape: f32[2,8,8,12], index: 4, kind: input, shape index: {}]   ;;  %s2747_s5 = inlined_call_operand.hbm [shape: bf16[2,8,8,28], index: 5, kind: input, shape index: {}]   ;;  %s2748_s6 = inlined_call_operand.hbm [shape: f32[8,1,32], index: 6, kind: input, shape index: {}]   ;;  %s2749_s7 = inlined_call_operand.hbm [shape: f32[2,8,8,32], index: 7, kind: input, shape index: {}]   ;;  %s2750_s8 = inlined_call_operand.hbm [shape: f32[2,8,8,60], index: 8, kind: output, shape index: {}]  }
   0x1   :  { %2795 = sst [smem:[#allocation41_spill]] %s2742_s0 }
   0x2   :  { %2796 = sst [smem:[#allocation42_spill]] %s2743_s1 }
   0x3   :  { %2797 = sst [smem:[#allocation43_spill]] %s2744_s2 }
   0x4   :  { %2798 = sst [smem:[#allocation44_spill]] %s2746_s4 }
   0x5   :  { %2799 = sst [smem:[#allocation45_spill]] %s2747_s5 }
   0x6   :  { %2800 = sst [smem:[#allocation46_spill]] %s2748_s6 }
   0x7   :  { %2801 = sst [smem:[#allocation47_spill]] %s2749_s7 }
   0x8   :  { %2802 = sst [smem:[#allocation48_spill]] %s2750_s8 }
   0x9   :  { %13 = vsyncpa [#allocation5], 0 }
   0xa   :  { %14 = vsyncpa [#allocation3], 0 }
   0xb   :  { %16 = vsyncpa [#allocation3 + $0x1], 0 }
   0xc   :  { %17 = vsyncpa [#allocation8], 0 }
   0xd   :  { %19 = vsyncpa [#allocation8 + $0x1], 0 }
   0xe   :  { %20 = vsyncpa [#allocation11], 0 }
   0xf   :  { %22 = vsyncpa [#allocation11 + $0x1], 0 }
  0x10   :  { %23 = vsyncpa [#allocation14], 0 }
  0x11   :  { %25 = vsyncpa [#allocation14 + $0x1], 0 }
  0x12   :  { %26 = vsyncpa [#allocation4], 0 }
  0x13   :  { %28 = vsyncpa [#allocation4 + $0x1], 0  ;;  %s2040_s27 = smov 0   ;;  %s2042_s28 = smov 0  }
  0x14   :  { %s2044_s29 = smov 0   ;;  %s2046_s30 = smov 0  }
  0x15   :  { %s2048_s9 = smov 0   ;;  %s2050_s10 = smov 0  }
  0x16   :  { %s2052_s11 = smov 0   ;;  %s2054_s12 = smov 0  }
  0x17   :  { %s2056_s13 = smov 0   ;;  %s2058_s14 = smov 0  }
  0x18   :  { %s2060_s15 = smov 0   ;;  %s2062_s16 = smov 0  }
  0x19   :  { %s2064_s17 = smov 0   ;;  %s2066_s18 = smov 0  }
  0x1a LB: > { %2803 = sst [smem:[#allocation24_spill]] %s1935_s29  ;;  %s1345_s19 = sadd.s32 4294967294, %s1979_s18   ;;  %s1979_s18 = sphi %s2066_s18, %s34_s18   ;;  %s1975_s17 = sphi %s2064_s17, %s2895_s17   ;;  %s1971_s16 = sphi %s2062_s16, %s2894_s16   ;;  %s1967_s15 = sphi %s2060_s15, %s2893_s15   ;;  %s1963_s14 = sphi %s2058_s14, %s2892_s14   ;;  %s1959_s13 = sphi %s2056_s13, %s2904_s13   ;;  %s1955_s12 = sphi %s2054_s12, %s2903_s12   ;;  %s1951_s11 = sphi %s2052_s11, %s2902_s11   ;;  %s1947_s10 = sphi %s2050_s10, %s2901_s10   ;;  %s1943_s9 = sphi %s2048_s9, %s2900_s9   ;;  %s1939_s30 = sphi %s2046_s30, %s2899_s30   ;;  %s1935_s29 = sphi %s2044_s29, %s2898_s29   ;;  %s1931_s28 = sphi %s2042_s28, %s2897_s28   ;;  %s1927_s27 = sphi %s2040_s27, %s2896_s27  }
  0x1b   : > { %2804 = sst [smem:[#allocation25_spill]] %s1947_s10  ;;  %s43_s20 = sadd.s32 1, %s1971_s16 }
  0x1c   : > { %2805 = sst [smem:[#allocation26_spill]] %s1951_s11  ;;  %p44_p0 = scmp.ge.s32.totalorder %s43_s20, 8 }
  0x1d   : > { %2806 = sst [smem:[#allocation27_spill]] %s1959_s13  ;;  %s46_s21 = sadd.s32 1, %s1975_s17 }
  0x1e   : > { %2807 = sst [smem:[#allocation28_spill]] %s1963_s14  ;;  %s76_s22 = sadd.s32 1, %s1959_s13 }
  0x1f   : > { %2808 = sst [smem:[#allocation29_spill]] %s1967_s15  ;;  %p2765_p1 = scmp.ne.s32.totalorder %s1959_s13, %s1955_s12 }
  0x20   : > { %2809 = sst [smem:[#allocation30_spill]] %s1971_s16  ;;  %s2906_s20 = smov (%p44_p0, %s43_s20), 0 }
  0x21   : > { %2810 = sst [smem:[#allocation31_spill]] %s1975_s17  ;;  %s2908_s21 = smov (!%p44_p0, %s46_s21), %s1975_s17 }
  0x22   : > { %2811 = sst [smem:[#allocation32_spill]] %s2906_s20  ;;  %s2121_s23 = ssub.s32 %s1971_s16, %s2906_s20 }
  0x23   : > { %p2768_p2 = scmp.eq.s32.totalorder %s1979_s18, 0  ;;  %p48_p3 = scmp.ge.s32.totalorder %s2908_s21, 2 }
  0x24   : > { %p2766_p4 = scmp.ne.s32.totalorder %s1955_s12, %s1951_s11  ;;  %p285_p7 = scmp.eq.s32.totalorder %s1345_s19, 15 }
  0x25   : > { %p2131_p5 = por %p2768_p2, %p2765_p1  ;;  %s2910_s21 = smov (%p48_p3, %s2908_s21), 0 }
  0x26   : > { %2813 = sst [smem:[#allocation33_spill]] %s2910_s21  ;;  %s2140_s25 = ssub.s32 %s1975_s17, %s2910_s21 }
  0x27   : > { %2814 = sst [smem:[#allocation34_spill]] %s2140_s25  ;;  %p2767_p8 = scmp.lt.s32.totalorder %s1979_s18, 16 }
  0x28   : > { %s73_s26 = sor.u32 %s2121_s23, %s2140_s25  ;;  %p2149_p11 = por %p285_p7, %p2766_p4 }
  0x29   : > { %p74_p10 = scmp.eq.s32.totalorder %s73_s26, 0  ;;  %s2154_s8 = sand.u32 1, %s1959_s13  }
  0x2a   : > { %s2815_s20 = scalar_select %p2149_p11, 1, 0 }
  0x2b   : > { %s1350_s15 = sshll.u32 %s1975_s17, 3  ;;  %s2161_s19 = sshll.u32 %s2154_s8, 2 }
  0x2c   : > { %2816 = sst [smem:[#allocation35_spill]] %s2815_s20  ;;  %s2164_s21 = sadd.s32 %s1971_s16, %s1350_s15 }
  0x2d   : > { %s2158_s14 = scalar_select %p74_p10, %s1959_s13, %s76_s22  }
  0x2e   : > { %2818 = sst [smem:[#allocation37_spill]] %s2161_s19  ;;  %s2167_s7 = sshll.u32 %s2164_s21, 6 }
  0x2f   : > { %2817 = sst [smem:[#allocation36_spill]] %s2158_s14  ;;  %p2173_p12 = pnand %p2767_p8, %p2131_p5 }
  0x30   : > { %2819 = sst [smem:[#allocation38_spill]] %s2167_s7  ;;  %s2178_s20 = sand.u32 1, %s1979_s18  }
  0x31   : > { %s2820_s26 = scalar_select %p2173_p12, 1, 0 }
  0x32   : > { %s2821_s2 = sld [smem:[#allocation43_spill]]  ;;  %s338_s15 = scalar_lea.vmem [#allocation7], %s2161_s19 }
  0x33   : > { %s347_s24 = sshll.u32 %s338_s15, 4  ;;  %s2776_s29 = scalar_lea.sflag [#allocation8], %s2178_s20  ;;  %s2187_s24 = int_to_ptr.vmem [resolvable:$true] %s347_s24 }
  0x34   : > { %p2195_p0 = pneg %p2173_p12 }
  0x38   : > { %s2184_s17 = scalar_lea.hbm %s2821_s2, %s2167_s7  ;;  %s1595_s1 = scalar_lea.hbm %s2821_s2, 1024 }
  0x39   : > { %s1590_s0 = scalar_lea.hbm %s2184_s17, 64  ;;  %p1596_p7 = scmp.lt.u32.totalorder %s2184_s17, %s2821_s2 }
  0x3a   : > { %p1591_p13 = scmp.ne.s32.totalorder %s2184_s17, %s1590_s0  ;;  %p1597_p10 = scmp.lt.u32.totalorder %s1595_s1, %s1590_s0 }
  0x3b   : > { %p1599_p1 = scmp.lt.u32.totalorder %s1590_s0, %s2184_s17 }
  0x3c   : > { %p1593_p3 = pnand %p2195_p0, %p1591_p13  ;;  %p1598_p9 = por %p1597_p10, %p1596_p7 }
  0x3e   : > { %p1594_p5 = pneg %p1593_p3  ;;  %p1600_p4 = por %p1599_p1, %p1598_p9 }
  0x40   : > { %p1601_p8 = pnand %p1600_p4, %p1594_p5 }
  0x42   : > { %1604 = shalt.err (!%p1601_p8)
}
  0x43   : > { %s1605_s25 = scalar_lea.vmem %s2187_s24, 64  ;;  %s1981_s14 = smov [#allocation7]  }
  0x44   : > { %p1606_p13 = scmp.ne.s32.totalorder %s2187_s24, %s1605_s25  ;;  %s1610_s22 = sshll.u32 %s1981_s14, 4  ;;  %s1611_s22 = int_to_ptr.vmem [resolvable:$false] %s1610_s22 }
  0x45   : > { %s1612_s19 = scalar_lea.vmem %s1611_s22, 128  ;;  %p1613_p6 = scmp.lt.s32.totalorder %s2187_s24, %s1611_s22 }
  0x46   : > { %p1608_p3 = pnand %p1606_p13, %p2195_p0  ;;  %p1614_p11 = scmp.lt.s32.totalorder %s1612_s19, %s1605_s25 }
  0x48   : > { %p1609_p2 = pneg %p1608_p3  ;;  %p1615_p7 = por %p1614_p11, %p1613_p6 }
  0x4a   : > { %p1616_p10 = pnand %p1615_p7, %p1609_p2 }
  0x4c   : > { %1619 = shalt.err (!%p1616_p10)
}
  0x4d   : > { %1444 = dma.hbm_to_vmem [thread:$0]  (!%p2173_p12), %s2184_s17, 64, %s2187_s24, %s2776_s29  }
  0x4e   : > { %s1357_s0 = sshll.u32 %s2164_s21, 7  ;;  %s2823_s4 = sld [smem:[#allocation44_spill]] }
  0x4f   : > { %s2224_s14 = scalar_lea.hbm %s2745_s3, %s1357_s0  ;;  %s2824_s2 = sshll.u32 %s2154_s8, 3 }
  0x50   : > { %s378_s7 = scalar_lea.vmem [#allocation10], %s2824_s2  ;;  %s2775_s17 = scalar_lea.sflag [#allocation11], %s2178_s20 }
  0x51   : > { %s387_s13 = sshll.u32 %s378_s7, 4  ;;  %s388_s13 = int_to_ptr.vmem [resolvable:$true] %s387_s13 }
  0x54   : > { %s2229_s19 = scalar_lea.hbm %s2823_s4, %s1357_s0  ;;  %s1625_s15 = scalar_lea.hbm %s2823_s4, 2048 }
  0x55   : > { %s1620_s21 = scalar_lea.hbm %s2229_s19, 128  ;;  %p1626_p6 = scmp.lt.u32.totalorder %s2229_s19, %s2823_s4 }
  0x56   : > { %p1621_p1 = scmp.ne.s32.totalorder %s2229_s19, %s1620_s21  ;;  %p1627_p8 = scmp.lt.u32.totalorder %s1625_s15, %s1620_s21 }
  0x57   : > { %p1629_p11 = scmp.lt.u32.totalorder %s1620_s21, %s2229_s19 }
  0x58   : > { %p1623_p2 = pnand %p1621_p1, %p2195_p0  ;;  %p1628_p9 = por %p1627_p8, %p1626_p6 }
  0x5a   : > { %p1624_p4 = pneg %p1623_p2  ;;  %p1630_p5 = por %p1629_p11, %p1628_p9 }
  0x5c   : > { %p1631_p13 = pnand %p1630_p5, %p1624_p4 }
  0x5e   : > { %1634 = shalt.err (!%p1631_p13)
}
  0x5f   : > { %s1635_s2 = scalar_lea.vmem %s388_s13, 128  ;;  %s1982_s7 = smov [#allocation10]  }
  0x60   : > { %p1636_p3 = scmp.ne.s32.totalorder %s388_s13, %s1635_s2  ;;  %s1640_s22 = sshll.u32 %s1982_s7, 4  ;;  %s1641_s22 = int_to_ptr.vmem [resolvable:$false] %s1640_s22 }
  0x61   : > { %s1642_s24 = scalar_lea.vmem %s1641_s22, 256  ;;  %p1643_p1 = scmp.lt.s32.totalorder %s388_s13, %s1641_s22 }
  0x62   : > { %p1638_p7 = pnand %p1636_p3, %p2195_p0  ;;  %p1644_p2 = scmp.lt.s32.totalorder %s1642_s24, %s1635_s2 }
  0x64   : > { %p1639_p10 = pneg %p1638_p7  ;;  %p1645_p12 = por %p1644_p2, %p1643_p1 }
  0x66   : > { %p1646_p6 = pnand %p1645_p12, %p1639_p10 }
  0x68   : > { %1649 = shalt.err (!%p1646_p6)
}
  0x69   : > { %p2825_p8 = scmp.ne.s32.totalorder %s2820_s26, 0  ;;  %s214_s21 = sadd.s32 1, %s1947_s10 }
  0x6a   : > { %p221_p12 = scmp.ne.s32.totalorder %s1947_s10, %s1943_s9  ;;  %p2826_p4 = scmp.eq.s32.totalorder %s2121_s23, 0 }
  0x6b   : > { %1450 = dma.hbm_to_vmem [thread:$0]  (!%p2825_p8), %s2229_s19, 128, %s388_s13, %s2775_s17  }
  0x6c   : > { %s2259_s1 = scalar_select %p2826_p4, %s1947_s10, %s214_s21  }
  0x6d   : > { %p2828_p9 = scmp.eq.s32.totalorder %s1979_s18, 0  ;;  %s416_s15 = sand.u32 1, %s1947_s10  }
  0x6e   : > { %2827 = sst [smem:[#allocation39_spill]] %s2259_s1  ;;  %s1364_s0 = sshll.u32 %s1971_s16, 4 }
  0x6f   : > { %p223_p11 = por %p221_p12, %p2828_p9  ;;  %s2829_s6 = sld [smem:[#allocation46_spill]] }
  0x70   : > { %s417_s13 = scalar_lea.vmem [#allocation13], %s416_s15  ;;  %p2830_p13 = scmp.lt.s32.totalorder %s1979_s18, 16 }
  0x71   : > { %s424_s19 = sshll.u32 %s417_s13, 4  ;;  %s2774_s22 = scalar_lea.sflag [#allocation14], %s2178_s20  ;;  %s2272_s19 = int_to_ptr.vmem [resolvable:$true] %s424_s19 }
  0x72   : > { %p2276_p3 = pnand %p2830_p13, %p223_p11 }
  0x74   : > { %p1652_p10 = pneg %p2276_p3 }
  0x75   : > { %s2270_s7 = scalar_lea.hbm %s2829_s6, %s1364_s0  ;;  %s1655_s0 = scalar_lea.hbm %s2829_s6, 128 }
  0x76   : > { %s1650_s24 = scalar_lea.hbm %s2270_s7, 16  ;;  %p1656_p6 = scmp.lt.u32.totalorder %s2270_s7, %s2829_s6 }
  0x77   : > { %p1651_p7 = scmp.ne.s32.totalorder %s2270_s7, %s1650_s24  ;;  %p1657_p12 = scmp.lt.u32.totalorder %s1655_s0, %s1650_s24 }
  0x78   : > { %p1659_p9 = scmp.lt.u32.totalorder %s1650_s24, %s2270_s7 }
  0x79   : > { %p1653_p1 = pnand %p1652_p10, %p1651_p7  ;;  %p1658_p4 = por %p1657_p12, %p1656_p6 }
  0x7b   : > { %p1654_p2 = pneg %p1653_p1  ;;  %p1660_p11 = por %p1659_p9, %p1658_p4 }
  0x7d   : > { %p1661_p13 = pnand %p1660_p11, %p1654_p2 }
  0x7f   : > { %1664 = shalt.err (!%p1661_p13)
}
  0x80   : > { %s1665_s13 = scalar_lea.vmem %s2272_s19, 16  ;;  %s1983_s21 = smov [#allocation13]  }
  0x81   : > { %p1666_p7 = scmp.ne.s32.totalorder %s2272_s19, %s1665_s13  ;;  %s1670_s15 = sshll.u32 %s1983_s21, 4  ;;  %s1671_s15 = int_to_ptr.vmem [resolvable:$false] %s1670_s15 }
  0x82   : > { %s1672_s25 = scalar_lea.vmem %s1671_s15, 32  ;;  %p1673_p8 = scmp.lt.s32.totalorder %s2272_s19, %s1671_s15 }
  0x83   : > { %p1668_p1 = pnand %p1666_p7, %p1652_p10  ;;  %p1674_p6 = scmp.lt.s32.totalorder %s1672_s25, %s1665_s13 }
  0x85   : > { %p1669_p5 = pneg %p1668_p1  ;;  %p1675_p12 = por %p1674_p6, %p1673_p8 }
  0x87   : > { %p1676_p4 = pnand %p1675_p12, %p1669_p5 }
  0x89   : > { %1679 = shalt.err (!%p1676_p4)
}
  0x8a   : > { %s2832_s24 = sld [smem:[#allocation27_spill]]  ;;  %s2833_s0 = sld [smem:[#allocation38_spill]] }
  0x8b   : > { %s2834_s2 = sld [smem:[#allocation37_spill]]  ;;  %s2309_s13 = sadd.s32 4294967295, %s1979_s18  }
  0x8c   : > { %1456 = dma.hbm_to_vmem [thread:$0]  (!%p2276_p3), %s2270_s7, 16, %s2272_s19, %s2774_s22  }
  0x8d   : > { %p2778_p8 = scmp.eq.s32.totalorder %s2309_s13, 0  ;;  %p253_p5 = scmp.ne.s32.totalorder %s1931_s28, %s1927_s27 }
  0x8e   : > { %p279_p10 = scmp.eq.s32.totalorder %s2309_s13, 15  ;;  %p1346_p2 = scmp.ge.s32.totalorder %s1979_s18, 1 }
  0x8f   : > { %p2835_p9 = scmp.ne.s32.totalorder %s1955_s12, %s1951_s11  ;;  %p2837_p3 = scmp.ne.s32.totalorder %s1943_s9, %s1939_s30 }
  0x90   : > { %p2336_p7 = por %p253_p5, %p2778_p8  ;;  %p2842_p1 = scmp.ne.s32.totalorder %s2832_s24, %s1955_s12 }
  0x91   : > { %p2321_p11 = por %p2778_p8, %p2835_p9  ;;  %p2330_p13 = por %p2837_p3, %p2778_p8 }
  0x92   : > { %s2840_s19 = scalar_select %p2336_p7, 1, 0 }
  0x93   : > { %s2836_s23 = scalar_select %p2321_p11, 1, 0 }
  0x94   : > { %s2838_s7 = scalar_select %p2330_p13, 1, 0 }
  0x95   : > { %2841 = sst [smem:[#allocation37_spill]] %s2840_s19  ;;  %p2343_p6 = por %p279_p10, %p2842_p1 }
  0x96   : > { %2839 = sst [smem:[#allocation38_spill]] %s2838_s7  ;;  %p292_p12 = scmp.lt.s32.totalorder %s1979_s18, 17 }
  0x97   : > { %s2843_s27 = scalar_select %p2343_p6, 1, 0 }
  0x98   : > { %p2348_p4 = pnand %p1346_p2, %p292_p12  ;;  %s2846_s25 = sld [smem:[#allocation42_spill]] }
  0x99   : > { %2844 = sst [smem:[#allocation40_spill]] %s2843_s27  ;;  %s318_s24 = scalar_lea.vmem [#allocation6], %s2834_s2 }
  0x9a   : > { %s2845_s21 = scalar_select %p2348_p4, 1, 0 }
  0x9b   : > { %s327_s17 = sshll.u32 %s318_s24, 4  ;;  %s315_s29 = scalar_lea.sflag [#allocation3], %s2154_s8  ;;  %s328_s17 = int_to_ptr.vmem [resolvable:$true] %s327_s17 }
  0x9e   : > { %s2356_s22 = scalar_lea.hbm %s2846_s25, %s2833_s0  ;;  %s1685_s15 = scalar_lea.hbm %s2846_s25, 1024 }
  0x9f   : > { %s1680_s4 = scalar_lea.hbm %s2356_s22, 64  ;;  %p1686_p3 = scmp.lt.u32.totalorder %s2356_s22, %s2846_s25 }
  0xa0   : > { %p1681_p10 = scmp.ne.s32.totalorder %s2356_s22, %s1680_s4  ;;  %p1687_p1 = scmp.lt.u32.totalorder %s1685_s15, %s1680_s4 }
  0xa1   : > { %p1689_p8 = scmp.lt.u32.totalorder %s1680_s4, %s2356_s22 }
  0xa2   : > { %p1683_p2 = pnand %p1681_p10, %p2195_p0  ;;  %p1688_p12 = por %p1687_p1, %p1686_p3 }
  0xa4   : > { %p1684_p9 = pneg %p1683_p2  ;;  %p1690_p6 = por %p1689_p8, %p1688_p12 }
  0xa6   : > { %p1691_p5 = pnand %p1690_p6, %p1684_p9 }
  0xa8   : > { %1694 = shalt.err (!%p1691_p5)
}
  0xa9   : > { %s1695_s24 = scalar_lea.vmem %s328_s17, 64  ;;  %s1984_s10 = smov [#allocation6]  }
  0xaa   : > { %p1696_p7 = scmp.ne.s32.totalorder %s328_s17, %s1695_s24  ;;  %s1700_s11 = sshll.u32 %s1984_s10, 4  ;;  %s1701_s11 = int_to_ptr.vmem [resolvable:$false] %s1700_s11 }
  0xab   : > { %s1702_s6 = scalar_lea.vmem %s1701_s11, 128  ;;  %p1703_p13 = scmp.lt.s32.totalorder %s328_s17, %s1701_s11 }
  0xac   : > { %p1698_p10 = pnand %p1696_p7, %p2195_p0  ;;  %p1704_p11 = scmp.lt.s32.totalorder %s1702_s6, %s1695_s24 }
  0xae   : > { %p1699_p2 = pneg %p1698_p10  ;;  %p1705_p4 = por %p1704_p11, %p1703_p13 }
  0xb0   : > { %p1706_p1 = pnand %p1705_p4, %p1699_p2 }
  0xb2   : > { %1709 = shalt.err (!%p1706_p1)
}
  0xb3   : > { %p2847_p3 = scmp.ne.s32.totalorder %s2820_s26, 0  ;;  %p2848_p8 = scmp.eq.s32.totalorder %s2309_s13, 0 }
  0xb4   : > { %p2849_p7 = scmp.ne.s32.totalorder %s2845_s21, 0  ;;  %s2852_s10 = sshll.u32 %s2154_s8, 3 }
  0xb5   : > { %1441 = dma.hbm_to_vmem [thread:$0]  (!%p2847_p3), %s2356_s22, 64, %s328_s17, %s315_s29  }
  0xb6   : > { %p2850_p6 = pneg %p2849_p7  ;;  %s358_s11 = scalar_lea.vmem [#allocation9], %s2852_s10 }
  0xb7   : > { %s367_s16 = sshll.u32 %s358_s11, 4  ;;  %s2853_s15 = sld [smem:[#allocation45_spill]]  ;;  %s2390_s16 = int_to_ptr.vmem [resolvable:$true] %s367_s16 }
  0xb8   : > { %p2384_p5 = pnand %p2850_p6, %p2848_p8  ;;  %s2855_s17 = sld [smem:[#allocation41_spill]] }
  0xba   : > { %p1712_p13 = pneg %p2384_p5 }
  0xbd   : > { %s2854_s24 = smov %s2853_s15  ;;  %s2396_s6 = scalar_lea.hbm %s2853_s15, %s2833_s0 }
  0xbe   : > { %s2856_s22 = smov %s2855_s17  ;;  %s1710_s27 = scalar_lea.hbm %s2855_s17, 32 }
  0xbf   : > { %p1711_p11 = scmp.ne.s32.totalorder %s2856_s22, %s1710_s27  ;;  %p1717_p12 = scmp.lt.u32.totalorder %s1710_s27, %s2856_s22 }
  0xc1   : > { %p1713_p4 = pnand %p1712_p13, %p1711_p11 }
  0xc3   : > { %p1714_p9 = pneg %p1713_p4 }
  0xc5   : > { %p1719_p10 = pnand %p1717_p12, %p1714_p9 }
  0xc7   : > { %1722 = shalt.err (!%p1719_p10)
}
  0xc8   : > { %s1985_s0 = smov [#allocation2]   ;;  %s1723_s7 = scalar_lea.hbm %s2224_s14, 128 }
  0xc9   : > { %1437 = dma.hbm_to_smem (!%p2384_p5), %s2856_s22, 32, %s1985_s0, [#allocation5]  }
  0xca   : > { %p1724_p2 = scmp.ne.s32.totalorder %s2224_s14, %s1723_s7  ;;  %s1728_s1 = scalar_lea.hbm %s2745_s3, 2048 }
  0xcb   : > { %p1729_p6 = scmp.lt.u32.totalorder %s2224_s14, %s2745_s3  ;;  %p1730_p11 = scmp.lt.u32.totalorder %s1728_s1, %s1723_s7 }
  0xcc   : > { %p1726_p1 = pnand %p1724_p2, %p2195_p0  ;;  %p1732_p4 = scmp.lt.u32.totalorder %s1723_s7, %s2224_s14 }
  0xcd   : > { %p1731_p13 = por %p1730_p11, %p1729_p6 }
  0xce   : > { %p1727_p8 = pneg %p1726_p1 }
  0xcf   : > { %p1733_p9 = por %p1732_p4, %p1731_p13 }
  0xd1   : > { %p1734_p12 = pnand %p1733_p9, %p1727_p8 }
  0xd3   : > { %1737 = shalt.err (!%p1734_p12)
}
  0xd4   : > { %s1738_s15 = scalar_lea.vmem %s2390_s16, 128  ;;  %s1986_s29 = smov [#allocation9]  }
  0xd5   : > { %p1739_p5 = scmp.ne.s32.totalorder %s2390_s16, %s1738_s15  ;;  %s1743_s17 = sshll.u32 %s1986_s29, 4  ;;  %s1744_s17 = int_to_ptr.vmem [resolvable:$false] %s1743_s17 }
  0xd6   : > { %s1745_s8 = scalar_lea.vmem %s1744_s17, 256  ;;  %p1746_p1 = scmp.lt.s32.totalorder %s2390_s16, %s1744_s17 }
  0xd7   : > { %p1741_p10 = pnand %p1739_p5, %p2195_p0  ;;  %p1747_p7 = scmp.lt.s32.totalorder %s1745_s8, %s1738_s15 }
  0xd9   : > { %p1742_p2 = pneg %p1741_p10  ;;  %p1748_p6 = por %p1747_p7, %p1746_p1 }
  0xdb   : > { %p1749_p11 = pnand %p1748_p6, %p1742_p2 }
  0xdd   : > { %1752 = shalt.err (!%p1749_p11)
}
  0xde   : > { %s2857_s10 = scalar_lea.sflag [#allocation8], %s2178_s20  ;;  %s398_s0 = scalar_lea.vmem [#allocation12], %s2834_s2 }
  0xdf   : > { %1447 = dma.hbm_to_vmem [thread:$0]  (!%p2847_p3), %s2224_s14, 128, %s2390_s16, %s2857_s10  }
  0xe0   : > { %s407_s11 = sshll.u32 %s398_s0, 4  ;;  %s1753_s25 = scalar_lea.hbm %s2396_s6, 64  ;;  %s408_s11 = int_to_ptr.vmem [resolvable:$true] %s407_s11 }
  0xe1   : > { %p1754_p7 = scmp.ne.s32.totalorder %s2396_s6, %s1753_s25  ;;  %s1758_s27 = scalar_lea.hbm %s2854_s24, 1024 }
  0xe2   : > { %p1759_p4 = scmp.lt.u32.totalorder %s2396_s6, %s2854_s24  ;;  %p1760_p9 = scmp.lt.u32.totalorder %s1758_s27, %s1753_s25 }
  0xe3   : > { %p1756_p8 = pnand %p1754_p7, %p2195_p0  ;;  %p1762_p5 = scmp.lt.u32.totalorder %s1753_s25, %s2396_s6 }
  0xe4   : > { %p1761_p12 = por %p1760_p9, %p1759_p4 }
  0xe5   : > { %p1757_p13 = pneg %p1756_p8 }
  0xe6   : > { %p1763_p10 = por %p1762_p5, %p1761_p12 }
  0xe8   : > { %p1764_p2 = pnand %p1763_p10, %p1757_p13 }
  0xea   : > { %1767 = shalt.err (!%p1764_p2)
}
  0xeb   : > { %s1768_s14 = scalar_lea.vmem %s408_s11, 64  ;;  %s1987_s2 = smov [#allocation12]  }
  0xec   : > { %p1769_p1 = scmp.ne.s32.totalorder %s408_s11, %s1768_s14  ;;  %s1773_s16 = sshll.u32 %s1987_s2, 4  ;;  %s1774_s16 = int_to_ptr.vmem [resolvable:$false] %s1773_s16 }
  0xed   : > { %s1775_s4 = scalar_lea.vmem %s1774_s16, 128  ;;  %p1776_p7 = scmp.lt.s32.totalorder %s408_s11, %s1774_s16 }
  0xee   : > { %p1771_p6 = pnand %p1769_p1, %p2195_p0  ;;  %p1777_p8 = scmp.lt.s32.totalorder %s1775_s4, %s1768_s14 }
  0xf0   : > { %p1772_p11 = pneg %p1771_p6  ;;  %p1778_p3 = por %p1777_p8, %p1776_p7 }
  0xf2   : > { %p1779_p4 = pnand %p1778_p3, %p1772_p11 }
  0xf4   : > { %1782 = shalt.err (!%p1779_p4)
}
  0xf5   : > { %p2858_p9 = scmp.ne.s32.totalorder %s2820_s26, 0  ;;  %s2859_s15 = scalar_lea.sflag [#allocation11], %s2178_s20 }
  0xf6   : > { %s2860_s29 = sld [smem:[#allocation24_spill]]  ;;  %s2861_s5 = sld [smem:[#allocation34_spill]] }
  0xf7   : > { %s2862_s17 = sld [smem:[#allocation31_spill]]  ;;  %p2864_p3 = scmp.eq.s32.totalorder %s1979_s18, 0 }
  0xf8   : > { %1453 = dma.hbm_to_vmem [thread:$0]  (!%p2858_p9), %s2396_s6, 64, %s408_s11, %s2859_s15  }
  0xf9   : > { %s2865_s27 = sld [smem:[#allocation47_spill]]  ;;  %p2867_p5 = scmp.lt.s32.totalorder %s1979_s18, 16 }
  0xfc   : > { %s240_s8 = sadd.s32 1, %s2860_s29  ;;  %p247_p0 = scmp.ne.s32.totalorder %s2860_s29, %s1931_s28 }
  0xfd   : > { %p2863_p13 = scmp.eq.s32.totalorder %s2861_s5, 0  ;;  %s433_s26 = sand.u32 1, %s2860_s29  }
  0xfe   : > { %p249_p12 = por %p247_p0, %p2864_p3  ;;  %s1365_s0 = sshll.u32 %s433_s26, 6 }
  0xff   : > { %s2463_s10 = scalar_select %p2863_p13, %s2860_s29, %s240_s8  }
 0x100   : > { %s1388_s25 = sshll.u32 %s2862_s17, 10  ;;  %s2866_s1 = smov %s2865_s27 }
 0x101   : > { %s2472_s30 = scalar_lea.hbm %s2865_s27, %s1388_s25  ;;  %s435_s6 = scalar_lea.vmem [#allocation15], %s1365_s0 }
 0x102   : > { %s442_s11 = sshll.u32 %s435_s6, 4  ;;  %p2476_p10 = pnand %p2867_p5, %p249_p12  ;;  %s2480_s11 = int_to_ptr.vmem [resolvable:$true] %s442_s11 }
 0x103   : > { %s1783_s2 = scalar_lea.hbm %s2472_s30, 1024  ;;  %s1788_s15 = scalar_lea.hbm %s2866_s1, 2048 }
 0x104   : > { %p1784_p2 = scmp.ne.s32.totalorder %s2472_s30, %s1783_s2  ;;  %p1785_p1 = pneg %p2476_p10 }
 0x105   : > { %p1789_p7 = scmp.lt.u32.totalorder %s2472_s30, %s2866_s1  ;;  %p1790_p8 = scmp.lt.u32.totalorder %s1788_s15, %s1783_s2 }
 0x106   : > { %p1786_p6 = pnand %p1785_p1, %p1784_p2  ;;  %p1792_p9 = scmp.lt.u32.totalorder %s1783_s2, %s2472_s30 }
 0x107   : > { %p1791_p4 = por %p1790_p8, %p1789_p7 }
 0x108   : > { %p1787_p11 = pneg %p1786_p6 }
 0x109   : > { %p1793_p0 = por %p1792_p9, %p1791_p4 }
 0x10b   : > { %p1794_p13 = pnand %p1793_p0, %p1787_p11 }
 0x10d   : > { %1797 = shalt.err (!%p1794_p13)
}
 0x10e   : > { %s1798_s17 = scalar_lea.vmem %s2480_s11, 1024  ;;  %s1988_s8 = smov [#allocation15]  }
 0x10f   : > { %p1799_p3 = scmp.ne.s32.totalorder %s2480_s11, %s1798_s17  ;;  %s1803_s26 = sshll.u32 %s1988_s8, 4  ;;  %s1804_s26 = int_to_ptr.vmem [resolvable:$false] %s1803_s26 }
 0x110   : > { %s1805_s0 = scalar_lea.vmem %s1804_s26, 2048  ;;  %p1806_p2 = scmp.lt.s32.totalorder %s2480_s11, %s1804_s26 }
 0x111   : > { %p1801_p12 = pnand %p1799_p3, %p1785_p1  ;;  %p1807_p6 = scmp.lt.s32.totalorder %s1805_s0, %s1798_s17 }
 0x113   : > { %p1802_p5 = pneg %p1801_p12  ;;  %p1808_p7 = por %p1807_p6, %p1806_p2 }
 0x115   : > { %p1809_p8 = pnand %p1808_p7, %p1802_p5 }
 0x117   : > { %1812 = shalt.err (!%p1809_p8)
}
 0x118   : > { %s1989_s25 = smov 128   ;;  %s1990_s7 = smov 8  }
 0x119   : > { %s2869_s19 = scalar_lea.sflag [#allocation14], %s2178_s20  ;;  %p2870_p1 = scmp.ne.s32.totalorder %s2845_s21, 0 }
 0x11a   : > { %1459 = dma.hbm_to_vmem [thread:$0]  (!%p2476_p10), %s2472_s30, 1024, %s2480_s11, %s2869_s19, %s1989_s25, %s1989_s25, %s1990_s7  }
 0x11b   : > { %454 = sbr.rel (%p2870_p1) target bundleno = 1211 (0x4bb), region = 52  ;;  %p2871_p11 = scmp.eq.s32.totalorder (!%p2870_p1), %s2309_s13, 0 }
 0x122   : > { %1898 = dma.done.wait (%p2871_p11), [#allocation5], 32   ;;  %p2872_p4 = pmov %p2871_p11 }
 0x123   : > { %s2516_s27 = sand.u32 1, %s1955_s12   ;;  %p2873_p10 = scmp.ne.s32.totalorder %s2836_s23, 0 }
 0x124   : > { %1900 = vsyncadd (%p2872_p4), [#allocation5], 4294967264  ;;  %s2519_s6 = sshll.u32 %s2516_s27, 2  ;;  %s461_s20 = scalar_lea.sflag [#allocation3], %s2516_s27 }
 0x125   : > { %s464_s30 = scalar_lea.vmem [#allocation6], %s2519_s6 }
 0x126   : > { %1902 = dma.done.wait (%p2873_p10), %s461_s20, 64  }
 0x127   : > { %1904 = vsyncadd (%p2873_p10), %s461_s20, 4294967232  ;;  %s469_s21 = sand.u32 1, %s2309_s13   ;;  %s473_s14 = scalar_lea.vmem [#allocation7], %s2519_s6 }
 0x128   : > { %s470_s11 = scalar_lea.sflag [#allocation8], %s469_s21 }
 0x129   : > { %1906 = dma.done.wait (%p2873_p10), %s470_s11, 192  }
 0x12a   : > { %1908 = vsyncadd (%p2873_p10), %s470_s11, 4294967104  ;;  %s2534_s2 = sshll.u32 %s2516_s27, 3  ;;  %s488_s4 = scalar_lea.sflag [#allocation11], %s469_s21 }
 0x12b   : > { %s482_s16 = scalar_lea.vmem [#allocation9], %s2534_s2  ;;  %s491_s15 = scalar_lea.vmem [#allocation10], %s2534_s2 }
 0x12c   : > { %1910 = dma.done.wait (%p2873_p10), %s488_s4, 192  }
 0x12d   : > { %1912 = vsyncadd (%p2873_p10), %s488_s4, 4294967104  ;;  %s2874_s13 = sld [smem:[#allocation38_spill]]  ;;  %s507_s29 = sand.u32 1, %s1943_s9  }
 0x12e   : > { %s500_s5 = scalar_lea.vmem [#allocation12], %s2519_s6  ;;  %s506_s17 = scalar_lea.sflag [#allocation14], %s469_s21 }
 0x12f   : > { %s508_s8 = scalar_lea.vmem [#allocation13], %s507_s29 }
 0x133   : > { %p2875_p9 = scmp.ne.s32.totalorder %s2874_s13, 0 }
 0x135   : > { %1914 = dma.done.wait (%p2875_p9), %s506_s17, 16  }
 0x136   : > { %1916 = vsyncadd (%p2875_p9), %s506_s17, 4294967280  ;;  %s2876_s26 = sld [smem:[#allocation37_spill]]  ;;  %s515_s0 = sand.u32 1, %s1931_s28  }
 0x137   : > { %s1375_s25 = sshll.u32 %s515_s0, 6 }
 0x138   : > { %s2549_s7 = scalar_lea.vmem [#allocation15], %s1375_s25 }
 0x13c   : > { %p2877_p0 = scmp.ne.s32.totalorder %s2876_s26, 0 }
 0x13e   : > { %1918 = dma.done.wait (%p2877_p0), %s506_s17, 1024  }
 0x13f   : > { %1920 = vsyncadd (%p2877_p0), %s506_s17, 4294966272 }
 0x140   : > { %522 = sfence }
 0x141   : > { %v641_v0 = vld [vmem:[%s491_s15] sm:$0xff]  ;;  %vm643_vm0 = vcmask 97280   ;;  %vm592_vm1 = vcmask 130048   ;;  %v1991_v3 = vmov 0.0   ;;  %v640_v5 = vld [vmem:[%s482_s16] sm:$0xff]  ;;  %vm794_vm2 = vcmask 261120  }
 0x142   : > { %v591_v1 = vld [vmem:[%s473_s14] sm:$0xf]  ;;  %v647_v2 = vmul.f32 %v641_v0, %v641_v0  ;;  %1397 = vmatprep.subr.bf16.mxu0 %v1991_v3  ;;  %1403 = vmatprep.subr.mxu1 %v1991_v3  ;;  %v1381_v7 = vld [vmem:[%s508_s8] ss:$0 sm:$0xff]  ;;  %vm1992_vm3 = vmmov 0   ;;  %v2573_v14 = vld [vmem:[%s2549_s7 + $0x18] sm:$0xff]  ;;  %v642_v21 = vmul.f32 %v640_v5, %v640_v5  ;;  %v759_v44 = vlaneseq }
 0x143   : > { %v597_v4 = vsel %vm592_vm1, %v591_v1, 0  ;;  %v2557_v6 = vld [vmem:[%s2549_s7 + $0x8] sm:$0xff]  ;;  %1404 = vmatpush3.xpose.msk.msra.mxu1 %vm643_vm0, %v641_v0  ;;  %v2561_v8 = vld [vmem:[%s2549_s7] sm:$0xff]  ;;  %v2564_v9 = vld [vmem:[%s2549_s7 + $0x10] sm:$0xff]  ;;  %1405 = vmatprep.mubr.msk.f32.mxu1 %vm1992_vm3, %v1991_v3  ;;  %v789_v17 = vmul.f32 %v1381_v7, %v2573_v14  ;;  %s2878_s23 = sld [smem:[#allocation28_spill]]  ;;  %vm878_vm4 = vcmask 1041409  }
 0x144   : > { %1398 = vmatpush3.bf16.xpose.msra.mxu0 %v597_v4  ;;  %v648_v10 = vsel %vm643_vm0, %v647_v2, 0.0  ;;  %1399 = vmatprep.mubr.msk.bf16.mxu0 %vm1992_vm3, %v1991_v3  ;;  %v787_v11 = vmul.f32 %v1381_v7, %v2557_v6  ;;  %v786_v12 = vmul.f32 %v1381_v7, %v2561_v8  ;;  %v788_v13 = vmul.f32 %v1381_v7, %v2564_v9  ;;  %v590_v18 = vld [vmem:[%s464_s30] sm:$0xf]  ;;  %v2593_v25 = vld [vmem:[%s2549_s7 + $0x30] sm:$0xff]  ;;  %v2598_v28 = vld [vmem:[%s2549_s7 + $0x38] sm:$0xff]  ;;  %s2879_s6 = sld [smem:[#allocation29_spill]] }
 0x145   : > { %649 = vadd.xlane.f32.xlu0 %v648_v10  ;;  %1408 = vmatprep.subr.bf16.mxu1 %v1991_v3  ;;  %v2582_v19 = vld [vmem:[%s2549_s7 + $0x20] sm:$0xff]  ;;  %v2587_v22 = vld [vmem:[%s2549_s7 + $0x28] sm:$0xff]  ;;  %v804_v23 = vsel %vm794_vm2, %v789_v17, 0.0  ;;  %v644_v26 = vsel %vm643_vm0, %v642_v21, 0.0  ;;  %v792_v30 = vmul.f32 %v1381_v7, %v2593_v25  ;;  %v793_v32 = vmul.f32 %v1381_v7, %v2598_v28  ;;  %s1993_s15 = smov 28   ;;  %s2880_s13 = sld [smem:[#allocation40_spill]] }
 0x146   : > { %1406 = vmatmul.mubr.msk.f32.vlgmr.msra.gmra.mrb[0].mxu1 %vm643_vm0, %v640_v5  ;;  %v798_v15 = vsel %vm794_vm2, %v787_v11, 0.0  ;;  %v795_v16 = vsel %vm794_vm2, %v786_v12, 0.0  ;;  %v801_v20 = vsel %vm794_vm2, %v788_v13, 0.0  ;;  %v790_v24 = vmul.f32 %v1381_v7, %v2582_v19  ;;  %s579_s8 = scalar_lea.vmem [#allocation16], %s2534_s2  ;;  %s2881_s7 = sld [smem:[#allocation48_spill]] }
 0x147   : > { %799 = vadd.xlane.f32.xlu1 %v798_v15  ;;  %1410 = vmatprep.mubr.msk.bf16.mxu1 %vm1992_vm3, %v1991_v3  ;;  %v791_v27 = vmul.f32 %v1381_v7, %v2587_v22  ;;  %v813_v33 = vsel %vm794_vm2, %v792_v30, 0.0  ;;  %v816_v34 = vsel %vm794_vm2, %v793_v32, 0.0  ;;  %v2610_v47 = vshrl.u32 %v759_v44, 7  ;;  %s1113_s26 = sshll.u32 %s579_s8, 4  ;;  %s1994_s2 = smov [#allocation16]   ;;  %s2666_s26 = int_to_ptr.vmem [resolvable:$true] %s1113_s26 }
 0x148   : > { %v807_v29 = vsel %vm794_vm2, %v790_v24, 0.0  ;;  %v845_v49 = vand.u32 127, %v759_v44  ;;  %vm880_vm5 = vcmask 1042434   ;;  %vm882_vm6 = vcmask 1043459  }
 0x149   : > { %796 = vadd.xlane.f32.xlu0 %v795_v16  ;;  %v810_v31 = vsel %vm794_vm2, %v791_v27, 0.0  ;;  %s582_s19 = sshra.s32 %s2878_s23, 7  ;;  %s587_s21 = sand.u32 127, %s2878_s23  ;;  %v761_v13 = vsub.s32 0, %v2610_v47  ;;  %vm884_vm7 = vcmask 1044484   ;;  %vm886_vm8 = vcmask 1045509  }
 0x14a   : > { %s1389_s20 = sshll.u32 %s582_s19, 7  ;;  %v848_v55 = vsub.s32 %v845_v49, %v2610_v47  ;;  %s581_s16 = sld [smem:[#allocation2 + %s2878_s23]]  ;;  %vm888_vm9 = vcmask 1046534   ;;  %vm890_vm10 = vcmask 1047559   ;;  %vm894_vm11 = vcmask 64512  }
 0x14b   : > { %1400 = vmatmul.mubr.msk.bf16.vlgmr.msra.gmra.mrb[0].mxu0 %vm592_vm1, %v590_v18  ;;  %802 = vadd.xlane.f32.xlu1 %v801_v20  ;;  %s1390_s30 = sadd.s32 128, %s1389_s20  ;;  %vm911_vm12 = vcmask 1043456   ;;  %s1384_s29 = sshll.u32 %s2879_s6, 3  ;;  %vm1093_vm13 = vcmask 228352   ;;  %vm1095_vm14 = vcmask 490496  }
 0x14c   : > { %s588_s11 = sadd.s32 %s1390_s30, %s587_s21  ;;  %s1098_s20 = scalar_lea.sflag [#allocation4], %s2516_s27 }
 0x14d   : > { %805 = vadd.xlane.f32.xlu0 %v804_v23  ;;  %s589_s14 = sld [smem:[#allocation2 + %s588_s11]]  ;;  %p2882_p3 = scmp.ne.s32.totalorder %s2880_s13, 0 }
 0x14e   : > { %s1817_s30 = sshll.u32 %s1994_s2, 4  ;;  %s1818_s30 = int_to_ptr.vmem [resolvable:$false] %s1817_s30 }
 0x14f   : > { %645 = vadd.xlane.f32.xlu1 %v644_v26  ;;  %s1819_s21 = scalar_lea.vmem %s1818_s30, 256  ;;  %p1820_p2 = scmp.lt.s32.totalorder %s2666_s26, %s1818_s30 }
 0x150   : > { %s767_s4 = smul.f32 -0.068041384, %s581_s16 }
 0x151   : > { %808 = vadd.xlane.f32.xlu0 %v807_v29 }
 0x153   : > { %811 = vadd.xlane.f32.xlu1 %v810_v31  ;;  %v819_v45 = vstv %s589_s14 }
 0x155   : > { %814 = vadd.xlane.f32.xlu0 %v813_v33 }
 0x157   : > { %817 = vadd.xlane.f32.xlu1 %v816_v34  ;;  %v768_v34 = vstv %s767_s4 }
 0x1d2   : > { %v650_v35 = vpop.xlane.xlu0 %649 }
 0x1d3   : > { %727 = vxpose.xlu0.b32.start.end [1/1] (short) (narrow) %v650_v35, 8 }
 0x1d4   : > { %v800_v42 = vpop.xlane.xlu1 %799 }
 0x1d5   : > { %v821_v48 = vadd.f32 %v819_v45, %v800_v42 }
 0x1d6   : > { %v797_v43 = vpop.xlane.xlu0 %796 }
 0x1d7   : > { %v820_v50 = vadd.f32 %v819_v45, %v797_v43  ;;  %v829_v54 = vmul.f32 0.57735026, %v821_v48 }
 0x1d8   : > { %v803_v46 = vpop.xlane.xlu1 %802 }
 0x1d9   : > { %v822_v52 = vadd.f32 %v819_v45, %v803_v46  ;;  %v828_v56 = vmul.f32 0.57735026, %v820_v50  ;;  %v853_v60 = vrot.slane %v829_v54, %v848_v55  ;;  %v907_v50 = vld [vmem:[%s500_s5] sm:$0xf]  ;;  %s1109_s5 = sadd.s32 %s2878_s23, %s1384_s29  ;;  %s1813_s23 = scalar_lea.vmem %s2666_s26, 128 }
 0x1da   : > { %v806_v51 = vpop.xlane.xlu0 %805  ;;  %s1385_s17 = sshll.u32 %s1109_s5, 7  ;;  %p1814_p13 = scmp.ne.s32.totalorder %s2666_s26, %s1813_s23 }
 0x1db   : > { %v823_v57 = vadd.f32 %v819_v45, %v806_v51  ;;  %v830_v59 = vmul.f32 0.57735026, %v822_v52  ;;  %v849_v61 = vrot.slane %v828_v56, %v848_v55  ;;  %v913_v51 = vsel %vm911_vm12, %v907_v50, 0  ;;  %s2664_s19 = scalar_lea.hbm %s2881_s7, %s1385_s17  ;;  %p1821_p6 = scmp.lt.s32.totalorder %s1819_s21, %s1813_s23 }
 0x1dc   : > { %v646_v53 = vpop.xlane.xlu1 %645  ;;  %1409 = vmatpush3.bf16.msra.mxu1 %v913_v51  ;;  %p1815_p12 = pnand %p1814_p13, %p2882_p3 }
 0x1dd   : > { %v831_v0 = vmul.f32 0.57735026, %v823_v57  ;;  %v857_v1 = vrot.slane %v830_v59, %v848_v55  ;;  %v879_v2 = vsel %vm878_vm4, %v853_v60, %v849_v61  ;;  %v964_v59 = vsub.s32 1, %v2610_v47  ;;  %p1822_p7 = por %p1821_p6, %p1820_p2 }
 0x1de   : > { %v809_v58 = vpop.xlane.xlu0 %808  ;;  %v971_v61 = vsub.s32 2, %v2610_v47  ;;  %p1816_p5 = pneg %p1815_p12 }
 0x1df   : > { %v824_v62 = vadd.f32 %v819_v45, %v809_v58  ;;  %v861_v7 = vrot.slane %v831_v0, %v848_v55  ;;  %v881_v10 = vsel %vm880_vm5, %v857_v1, %v879_v2  ;;  %v985_v1 = vsub.s32 4, %v2610_v47 }
 0x1e0   : > { %v812_v63 = vpop.xlane.xlu1 %811  ;;  %p1823_p8 = pnand %p1822_p7, %p1816_p5 }
 0x1e1   : > { %v825_v3 = vadd.f32 %v819_v45, %v812_v63  ;;  %v832_v5 = vmul.f32 0.57735026, %v824_v62  ;;  %v883_v17 = vsel %vm882_vm6, %v861_v7, %v881_v10  ;;  %v978_v63 = vsub.s32 3, %v2610_v47 }
 0x1e2   : > { %v815_v4 = vpop.xlane.xlu0 %814 }
 0x1e3   : > { %v826_v11 = vadd.f32 %v819_v45, %v815_v4  ;;  %v833_v15 = vmul.f32 0.57735026, %v825_v3  ;;  %v865_v16 = vrot.slane %v832_v5, %v848_v55  ;;  %v992_v3 = vsub.s32 5, %v2610_v47 }
 0x1e4   : > { %v818_v12 = vpop.xlane.xlu1 %817  ;;  %v1006_v5 = vsub.s32 7, %v2610_v47 }
 0x1e5   : > { %v827_v18 = vadd.f32 %v819_v45, %v818_v12  ;;  %v834_v21 = vmul.f32 0.57735026, %v826_v11  ;;  %v869_v26 = vrot.slane %v833_v15, %v848_v55  ;;  %v885_v27 = vsel %vm884_vm7, %v865_v16, %v883_v17 }
 0x1e7   : > { %v835_v30 = vmul.f32 0.57735026, %v827_v18  ;;  %v873_v31 = vrot.slane %v834_v21, %v848_v55  ;;  %v887_v33 = vsel %vm886_vm8, %v869_v26, %v885_v27 }
 0x219   : > { %v723_v36 = vpop.f32.mrb[0].mxu1 }
 0x21a   : > { %v1407_v37 = vpop.f32.mrb[1].mxu1  ;;  %v764_v24 = vmul.f32 2.0, %v723_v36  ;;  %v889_v36 = vsel %vm888_vm9, %v873_v31, %v887_v33 }
 0x21e   : > { %v2606_v38 = vpop.f32.mrb[0].mxu0 }
 0x21f   : > { %v1401_v39 = vpop.f32.mrb[1].mxu0  ;;  %v639_v37 = vmul.f32 0.14433756, %v2606_v38 }
 0x220   : > { %v636_v40 = vpop.f32.mrb[2].mxu0  ;;  %v877_v39 = vrot.slane %v835_v30, %v848_v55 }
 0x221   : > { %v1402_v41 = vpop.f32.mrb[3].mxu0 }
 0x222   : > { %v891_v42 = vsel %vm890_vm10, %v877_v39, %v889_v36 }
 0x253   : > { %v743_v20 = vpop.trf.xlu0 }
 0x254   : > { %v762_v23 = vrot.slane %v743_v20, %v761_v13 }
 0x256   : > { %v763_v29 = vadd.f32 %v762_v23, %v646_v53  ;;  %v999_v53 = vsub.s32 6, %v2610_v47 }
 0x258   : > { %v765_v32 = vsub.f32 %v763_v29, %v764_v24 }
 0x25a   : > { %v766_v35 = vmax.f32 %v765_v32, 0.0 }
 0x25c   : > { %v769_v40 = vmul.f32 %v768_v34, %v766_v35 }
 0x25e   : > { %v770_v41 = vadd.f32 %v769_v40, %v639_v37 }
 0x260   : > { %v893_v43 = vadd.f32 %v891_v42, %v770_v41 }
 0x262   : > { %v895_v44 = vsel %vm894_vm11, %v893_v43, -inf }
 0x263   : > { %896 = vmax.xlane.f32.xlu1 %v895_v44 }
 0x2f0   : > { %v897_v45 = vpop.xlane.xlu1 %896 }
 0x2f1   : > { %v898_v46 = vsub.f32 %v893_v43, %v897_v45 }
 0x2f3   : > { %v899_v48 = vmul.f32 1.442695, %v898_v46 }
 0x2f5   : > { %1586 = vpow2.f32 %v899_v48 }
 0x2ff   : > { %v1587_v49 = vpop.eup %1586 }
 0x300   : > { %v901_v38 = vsel %vm894_vm11, %v1587_v49, 0.0 }
 0x301   : > { %902 = vadd.xlane.f32.xlu1 %v901_v38 }
 0x38e   : > { %v903_v52 = vpop.xlane.xlu1 %902 }
 0x38f   : > { %1588 = vrcp.f32 %v903_v52 }
 0x399   : > { %v1589_v54 = vpop.eup %1588 }
 0x39a   : > { %v905_v55 = vmul.f32 %v1589_v54, %v1587_v49 }
 0x39c   : > { %v1000_v56 = vrot.slane %v905_v55, %v999_v53  ;;  %v958_v57 = vrot.slane %v905_v55, %v761_v13  ;;  %v906_v58 = vpack.c.bf16 %v905_v55, %v905_v55  ;;  %v965_v60 = vrot.slane %v905_v55, %v964_v59 }
 0x39d   : > { %v972_v62 = vrot.slane %v905_v55, %v971_v61  ;;  %v979_v0 = vrot.slane %v905_v55, %v978_v63  ;;  %v986_v2 = vrot.slane %v905_v55, %v985_v1  ;;  %v993_v4 = vrot.slane %v905_v55, %v992_v3 }
 0x39e   : > { %1002 = vbcast.lane.b32.xlu0 %v1000_v56, 256  ;;  %960 = vbcast.lane.b32.xlu1 %v958_v57, 256  ;;  %v1007_v7 = vrot.slane %v905_v55, %v1006_v5 }
 0x39f   : > { %1411 = vmatmul.mubr.msk.bf16.vlgmr.msra.gmra.mrb[4].mxu1 %vm894_vm11, %v906_v58 }
 0x3a2   : > { %967 = vbcast.lane.b32.xlu1 %v965_v60, 256 }
 0x3a6   : > { %974 = vbcast.lane.b32.xlu1 %v972_v62, 256 }
 0x3aa   : > { %981 = vbcast.lane.b32.xlu1 %v979_v0, 256 }
 0x3ae   : > { %988 = vbcast.lane.b32.xlu1 %v986_v2, 256 }
 0x3b2   : > { %995 = vbcast.lane.b32.xlu1 %v993_v4, 256 }
 0x3b6   : > { %1009 = vbcast.lane.b32.xlu1 %v1007_v7, 256 }
 0x410   : > { %v961_v10 = vpop.permute.xlu1 %960  ;;  %v1003_v15 = vpop.permute.xlu0 %1002 }
 0x411   : > { %v1011_v11 = vmul.f32 %v961_v10, %v2561_v8  ;;  %v1017_v47 = vmul.f32 %v1003_v15, %v2593_v25 }
 0x413   : > { %v1019_v16 = vsel %vm794_vm2, %v1011_v11, 0.0 }
 0x414   : > { %v968_v12 = vpop.permute.xlu1 %967  ;;  %v1020_v23 = vrot.slane %v1019_v16, 4 }
 0x415   : > { %v1012_v13 = vmul.f32 %v968_v12, %v2557_v6  ;;  %v1061_v6 = vsel %vm794_vm2, %v1017_v47, 0.0 }
 0x416   : > { %v1021_v30 = vadd.f32 %v1020_v23, %v1019_v16 }
 0x417   : > { %v1026_v17 = vsel %vm794_vm2, %v1012_v13, 0.0 }
 0x418   : > { %v1027_v18 = vrot.slane %v1026_v17, 4  ;;  %v975_v20 = vpop.permute.xlu1 %974  ;;  %v1022_v39 = vrot.slane %v1021_v30, 2 }
 0x419   : > { %v1013_v21 = vmul.f32 %v975_v20, %v2564_v9  ;;  %v1062_v9 = vrot.slane %v1061_v6, 4 }
 0x41a   : > { %v1028_v26 = vadd.f32 %v1027_v18, %v1026_v17  ;;  %v1023_v48 = vadd.f32 %v1022_v39, %v1021_v30 }
 0x41b   : > { %v1033_v24 = vsel %vm794_vm2, %v1013_v21, 0.0  ;;  %v1063_v44 = vadd.f32 %v1062_v9, %v1061_v6 }
 0x41c   : > { %v1034_v27 = vrot.slane %v1033_v24, 4  ;;  %v982_v8 = vpop.permute.xlu1 %981  ;;  %v1029_v33 = vrot.slane %v1028_v26, 2  ;;  %v1024_v57 = vrot.slane %v1023_v48, 1 }
 0x41d   : > { %v1014_v29 = vmul.f32 %v982_v8, %v2573_v14  ;;  %v1064_v54 = vrot.slane %v1063_v44, 2 }
 0x41e   : > { %v1035_v31 = vadd.f32 %v1034_v27, %v1033_v24  ;;  %v1030_v41 = vadd.f32 %v1029_v33, %v1028_v26  ;;  %v1025_v3 = vadd.f32 %v1024_v57, %v1023_v48 }
 0x41f   : > { %v1040_v32 = vsel %vm794_vm2, %v1014_v29, 0.0  ;;  %v1065_v1 = vadd.f32 %v1064_v54, %v1063_v44 }
 0x420   : > { %v1041_v34 = vrot.slane %v1040_v32, 4  ;;  %v989_v35 = vpop.permute.xlu1 %988  ;;  %v1036_v37 = vrot.slane %v1035_v31, 2  ;;  %v1031_v51 = vrot.slane %v1030_v41, 1 }
 0x421   : > { %v1015_v25 = vmul.f32 %v989_v35, %v2582_v19  ;;  %v1066_v13 = vrot.slane %v1065_v1, 1 }
 0x422   : > { %v1042_v40 = vadd.f32 %v1041_v34, %v1040_v32  ;;  %v1037_v45 = vadd.f32 %v1036_v37, %v1035_v31 }
 0x423   : > { %v1047_v36 = vsel %vm794_vm2, %v1015_v25, 0.0  ;;  %v1067_v23 = vadd.f32 %v1066_v13, %v1065_v1 }
 0x424   : > { %v1043_v42 = vrot.slane %v1042_v40, 2  ;;  %v1048_v14 = vrot.slane %v1047_v36, 4  ;;  %v996_v43 = vpop.permute.xlu1 %995  ;;  %v1038_v55 = vrot.slane %v1037_v45, 1 }
 0x425   : > { %v1016_v46 = vmul.f32 %v996_v43, %v2587_v22  ;;  %v1032_v22 = vadd.f32 %v1031_v51, %v1030_v41 }
 0x426   : > { %v1044_v49 = vadd.f32 %v1043_v42, %v1042_v40  ;;  %v1049_v38 = vadd.f32 %v1048_v14, %v1047_v36  ;;  %v1039_v2 = vadd.f32 %v1038_v55, %v1037_v45 }
 0x427   : > { %v1054_v50 = vsel %vm794_vm2, %v1016_v46, 0.0  ;;  %v1083_v11 = vsel %vm878_vm4, %v1032_v22, %v1025_v3 }
 0x428   : > { %v1050_v52 = vrot.slane %v1049_v38, 2  ;;  %v1055_v19 = vrot.slane %v1054_v50, 4  ;;  %v1010_v53 = vpop.permute.xlu1 %1009  ;;  %v1045_v58 = vrot.slane %v1044_v49, 1  ;;  %v1084_v15 = vsel %vm880_vm5, %v1039_v2, %v1083_v11 }
 0x429   : > { %v1018_v56 = vmul.f32 %v1010_v53, %v2598_v28 }
 0x42a   : > { %v1051_v59 = vadd.f32 %v1050_v52, %v1049_v38  ;;  %v1056_v60 = vadd.f32 %v1055_v19, %v1054_v50  ;;  %v1046_v4 = vadd.f32 %v1045_v58, %v1044_v49 }
 0x42b   : > { %v1068_v61 = vsel %vm794_vm2, %v1018_v56, 0.0 }
 0x42c   : > { %v1052_v62 = vrot.slane %v1051_v59, 1  ;;  %v1057_v63 = vrot.slane %v1056_v60, 2  ;;  %v1069_v0 = vrot.slane %v1068_v61, 4  ;;  %v1085_v18 = vsel %vm882_vm6, %v1046_v4, %v1084_v15 }
 0x42e   : > { %v1058_v5 = vadd.f32 %v1057_v63, %v1056_v60  ;;  %v1070_v7 = vadd.f32 %v1069_v0, %v1068_v61  ;;  %v1053_v10 = vadd.f32 %v1052_v62, %v1051_v59 }
 0x430   : > { %v1059_v28 = vrot.slane %v1058_v5, 1  ;;  %v1071_v12 = vrot.slane %v1070_v7, 2  ;;  %v1086_v20 = vsel %vm884_vm7, %v1053_v10, %v1085_v18 }
 0x432   : > { %v1060_v16 = vadd.f32 %v1059_v28, %v1058_v5  ;;  %v1072_v17 = vadd.f32 %v1071_v12, %v1070_v7 }
 0x434   : > { %v1073_v21 = vrot.slane %v1072_v17, 1  ;;  %v1087_v47 = vsel %vm886_vm8, %v1060_v16, %v1086_v20 }
 0x435   : > { %v1088_v26 = vsel %vm888_vm9, %v1067_v23, %v1087_v47 }
 0x436   : > { %v1074_v24 = vadd.f32 %v1073_v21, %v1072_v17 }
 0x438   : > { %v1089_v27 = vsel %vm890_vm10, %v1074_v24, %v1088_v26 }
 0x439   : > { %1090 = vrot.lane.b32.xlu1 %v1089_v27, %s1993_s15 }
 0x472   : > { %v949_v8 = vpop.f32.mrb[4].mxu1 }
 0x473   : > { %v1412_v29 = vpop.f32.mrb[5].mxu1 }
 0x474   : > { %v952_v6 = vpop.f32.mrb[6].mxu1 }
 0x475   : > { %v1413_v30 = vpop.f32.mrb[7].mxu1 }
 0x4ab   : > { %v1091_v31 = vpop.permute.xlu1 %1090 }
 0x4ac   : > { %v1094_v32 = vsel %vm1093_vm13, %v949_v8, %v1091_v31 }
 0x4ad   : > { %1096 = vst.msk [vmem:[%s579_s8] sm:$0xff] %vm1095_vm14, %v1094_v32 }
 0x4ae   : > { %1826 = shalt.err (!%p1823_p8)
}
 0x4af   : > { %s1827_s27 = scalar_lea.hbm %s2664_s19, 128  ;;  %s1831_s16 = scalar_lea.hbm %s2881_s7, 2048 }
 0x4b0   : > { %p1828_p1 = scmp.ne.s32.totalorder %s2664_s19, %s1827_s27  ;;  %p1832_p10 = scmp.lt.u32.totalorder %s2664_s19, %s2881_s7 }
 0x4b1   : > { %p1833_p9 = scmp.lt.u32.totalorder %s1831_s16, %s1827_s27  ;;  %p1835_p13 = scmp.lt.u32.totalorder %s1827_s27, %s2664_s19 }
 0x4b2   : > { %p1829_p11 = pnand %p1828_p1, %p2882_p3 }
 0x4b3   : > { %p1834_p0 = por %p1833_p9, %p1832_p10 }
 0x4b4   : > { %p1830_p4 = pneg %p1829_p11 }
 0x4b5   : > { %p1836_p12 = por %p1835_p13, %p1834_p0 }
 0x4b7   : > { %p1837_p5 = pnand %p1836_p12, %p1830_p4 }
 0x4b9   : > { %1840 = shalt.err (!%p1837_p5)
}
 0x4ba   : > { %1432 = dma.vmem_to_hbm [thread:$0]  (%p2882_p3), %s2666_s26, 128, %s2664_s19, %s1098_s20  }
 0x4bb PF: > { %s2883_s15 = sld [smem:[#allocation26_spill]]  ;;  %s2884_s29 = sld [smem:[#allocation35_spill]] }
 0x4bc   : > { %p1467_p2 = scmp.ge.s32.totalorder %s1979_s18, 2 }
 0x4c1   : > { %s1125_s5 = sand.u32 1, %s2883_s15   ;;  %p2885_p6 = scmp.ne.s32.totalorder %s2884_s29, 0 }
 0x4c2   : > { %s1126_s17 = scalar_lea.sflag [#allocation4], %s1125_s5 }
 0x4c3   : > { %p1461_p7 = pnand %p1467_p2, %p2885_p6 }
 0x4c5   : > { %1922 = dma.done.wait (!%p1461_p7), %s1126_s17, 128  }
 0x4c6   : > { %1924 = vsyncadd (!%p1461_p7), %s1126_s17, 4294967168  ;;  %s34_s18 = sadd.s32 1, %s1979_s18   ;;  %s2887_s13 = sld [smem:[#allocation24_spill]] }
 0x4c7   : > { %p2695_p8 = scmp.ge.s32.totalorder %s34_s18, 18   ;;  %s2888_s26 = sld [smem:[#allocation25_spill]] }
 0x4c8   : > { %s2889_s0 = sld [smem:[#allocation39_spill]]  ;;  %s2890_s25 = sld [smem:[#allocation27_spill]] }
 0x4c9   : > { %s2891_s19 = sld [smem:[#allocation36_spill]]  ;;  %s2892_s14 = sld [smem:[#allocation30_spill]] }
 0x4ca   : > { %s2893_s15 = sld [smem:[#allocation31_spill]]  ;;  %s2894_s16 = sld [smem:[#allocation32_spill]] }
 0x4cb   : > { %s2895_s17 = sld [smem:[#allocation33_spill]]  ;;  %s2896_s27 = smov %s1931_s28 }
 0x4cc   : > { %s2897_s28 = smov %s2887_s13  ;;  %s2898_s29 = smov %s2463_s10 }
 0x4cd   : > { %s2899_s30 = smov %s1943_s9  ;;  %s2900_s9 = smov %s2888_s26 }
 0x4ce   : > { %s2901_s10 = smov %s2889_s0  ;;  %s2902_s11 = smov %s1955_s12 }
 0x4cf   : > { %s2903_s12 = smov %s2890_s25  ;;  %s2904_s13 = smov %s2891_s19 }
 0x4d0   :  { %33 = sbr.rel (!%p2695_p8) target bundleno = 26 (0x1a), region = 174 }
 0x4d7   :  { %1131 = vsyncpa [#allocation3], 1 }
 0x4d8   :  { %1133 = vsyncpa [#allocation3 + $0x1], 1 }
 0x4d9   :  { %1134 = vsyncpa [#allocation8], 1 }
 0x4da   :  { %1136 = vsyncpa [#allocation8 + $0x1], 1 }
 0x4db   :  { %1137 = vsyncpa [#allocation11], 1 }
 0x4dc   :  { %1139 = vsyncpa [#allocation11 + $0x1], 1 }
 0x4dd   :  { %1140 = vsyncpa [#allocation14], 1 }
 0x4de   :  { %1142 = vsyncpa [#allocation14 + $0x1], 1 }
 0x4df   :  { %1143 = vsyncpa [#allocation4], 1 }
 0x4e0   :  { %1145 = vsyncpa [#allocation4 + $0x1], 1 }
 0x4e1   :  { %1146 = vsyncpa [#allocation5], 1 }
 0x4e2   :  { %1148 = vsyncpa [#allocation5 + $0x1], 1 }

// kernel: predict_structure.16
= control target key start
LH: loop header
LB: loop body
LE: loop exit
PB: predicated region body
PF: predicated region fallthrough
CT: control target
= control target key end

     0   :  { %vm391_vm0 = vcmask 261120   ;;  %s665_s1 = inlined_call_operand.vmem [shape: bf16[512,32], index: 1, kind: input, shape index: {}]   ;;  %s666_s0 = inlined_call_operand.vmem [shape: bf16[16,512], index: 0, kind: input, shape index: {}]   ;;  %s667_s2 = inlined_call_operand.vmem [shape: f32[1,32], index: 2, kind: input, shape index: {}]   ;;  %s668_s3 = inlined_call_operand.vmem [shape: f32[16,32], index: 3, kind: input, shape index: {}]   ;;  %s669_s4 = inlined_call_operand.vmem [shape: f32[16,32], index: 4, kind: output, shape index: {}]  }
   0x1   :  { %v479_v0 = vld [vmem:[%s665_s1 + $0x40] sm:$0xff]   ;;  %v483_v4 = vld [vmem:[%s665_s1 + $0x48] sm:$0xff]   ;;  %v487_v8 = vld [vmem:[%s665_s1 + $0x50] sm:$0xff]  }
   0x2   :  { %v480_v1 = vld [vmem:[%s665_s1 + $0xc0] sm:$0xff]   ;;  %435 = vmatprep.subr.bf16.mxu0 %v479_v0  ;;  %v484_v5 = vld [vmem:[%s665_s1 + $0xc8] sm:$0xff]   ;;  %v488_v9 = vld [vmem:[%s665_s1 + $0xd0] sm:$0xff]  }
   0x3   :  { %v481_v2 = vld [vmem:[%s665_s1] sm:$0xff]   ;;  %457 = vmatprep.subr.bf16.mxu1 %v480_v1  ;;  %v485_v6 = vld [vmem:[%s665_s1 + $0x8] sm:$0xff]   ;;  %v489_v10 = vld [vmem:[%s665_s1 + $0x10] sm:$0xff]  }
   0x4   :  { %v482_v3 = vld [vmem:[%s665_s1 + $0x80] sm:$0xff]   ;;  %436 = vmatpush3.bf16.msra.mxu0 %v481_v2  ;;  %v486_v7 = vld [vmem:[%s665_s1 + $0x88] sm:$0xff]   ;;  %v490_v11 = vld [vmem:[%s665_s1 + $0x90] sm:$0xff]  }
   0x5   :  { %458 = vmatpush3.bf16.msra.mxu1 %v482_v3  ;;  %437 = vmatprep.subr.bf16.mxu0 %v483_v4  ;;  %v491_v12 = vld [vmem:[%s665_s1 + $0x58] sm:$0xff]   ;;  %v495_v16 = vld [vmem:[%s665_s1 + $0x60] sm:$0xff]   ;;  %v499_v20 = vld [vmem:[%s665_s1 + $0x68] sm:$0xff]  }
   0x6   :  { %459 = vmatprep.subr.bf16.mxu1 %v484_v5  ;;  %v492_v13 = vld [vmem:[%s665_s1 + $0xd8] sm:$0xff]   ;;  %v496_v17 = vld [vmem:[%s665_s1 + $0xe0] sm:$0xff]   ;;  %v500_v21 = vld [vmem:[%s665_s1 + $0xe8] sm:$0xff]  }
   0x7   :  { %v493_v14 = vld [vmem:[%s665_s1 + $0x18] sm:$0xff]   ;;  %v497_v18 = vld [vmem:[%s665_s1 + $0x20] sm:$0xff]   ;;  %v501_v22 = vld [vmem:[%s665_s1 + $0x28] sm:$0xff]  }
   0x8   :  { %438 = vmatpush3.bf16.msra.mxu0 %v485_v6  ;;  %v494_v15 = vld [vmem:[%s665_s1 + $0x98] sm:$0xff]   ;;  %v498_v19 = vld [vmem:[%s665_s1 + $0xa0] sm:$0xff]   ;;  %v502_v23 = vld [vmem:[%s665_s1 + $0xa8] sm:$0xff]  }
   0x9   :  { %460 = vmatpush3.bf16.msra.mxu1 %v486_v7  ;;  %439 = vmatprep.subr.bf16.mxu0 %v487_v8  ;;  %v503_v24 = vld [vmem:[%s665_s1 + $0x70] sm:$0xff]   ;;  %v507_v28 = vld [vmem:[%s665_s1 + $0x78] sm:$0xff]   ;;  %v398_v38 = vld [vmem:[%s667_s2] ss:$0 sm:$0xff] }
   0xa   :  { %461 = vmatprep.subr.bf16.mxu1 %v488_v9  ;;  %v504_v25 = vld [vmem:[%s665_s1 + $0xf0] sm:$0xff]   ;;  %v508_v29 = vld [vmem:[%s665_s1 + $0xf8] sm:$0xff]   ;;  %v387_v49 = vld [vmem:[%s668_s3] sm:$0xff] }
   0xb   :  { %v505_v26 = vld [vmem:[%s665_s1 + $0x30] sm:$0xff]   ;;  %v509_v30 = vld [vmem:[%s665_s1 + $0x38] sm:$0xff]   ;;  %v388_v53 = vld [vmem:[%s668_s3 + $0x8] sm:$0xff] }
   0xc   :  { %440 = vmatpush3.bf16.msra.mxu0 %v489_v10  ;;  %v506_v27 = vld [vmem:[%s665_s1 + $0xb0] sm:$0xff]   ;;  %v510_v31 = vld [vmem:[%s665_s1 + $0xb8] sm:$0xff]  }
   0xd   :  { %462 = vmatpush3.bf16.msra.mxu1 %v490_v11  ;;  %441 = vmatprep.subr.bf16.mxu0 %v491_v12  ;;  %v511_v32 = vld [vmem:[%s666_s0] ss:$16 sps:$4 sm:$0xff]   ;;  %v513_v33 = vld [vmem:[%s666_s0 + $0x4] ss:$16 sps:$4 sm:$0xff]   ;;  %v514_v34 = vld [vmem:[%s666_s0 + $0x8] ss:$16 sps:$4 sm:$0xff]  }
   0xe   :  { %463 = vmatprep.subr.bf16.mxu1 %v492_v13  ;;  %v516_v35 = vld [vmem:[%s666_s0 + $0xc] ss:$16 sps:$4 sm:$0xff]   ;;  %337 = vmatprep.mubr.bf16.mxu0 %v513_v33 }
   0xf   :  { %378 = vmatprep.mubr.bf16.mxu1 %v516_v35 }
  0x10   :  { %442 = vmatpush3.bf16.msra.mxu0 %v493_v14 }
  0x11   :  { %464 = vmatpush3.bf16.msra.mxu1 %v494_v15  ;;  %443 = vmatprep.subr.bf16.mxu0 %v495_v16 }
  0x12   :  { %465 = vmatprep.subr.bf16.mxu1 %v496_v17 }
  0x14   :  { %444 = vmatpush3.bf16.msra.mxu0 %v497_v18 }
  0x15   :  { %466 = vmatpush3.bf16.msra.mxu1 %v498_v19  ;;  %445 = vmatprep.subr.bf16.mxu0 %v499_v20 }
  0x16   :  { %467 = vmatprep.subr.bf16.mxu1 %v500_v21 }
  0x18   :  { %446 = vmatpush3.bf16.msra.mxu0 %v501_v22 }
  0x19   :  { %468 = vmatpush3.bf16.msra.mxu1 %v502_v23  ;;  %447 = vmatprep.subr.bf16.mxu0 %v503_v24 }
  0x1a   :  { %469 = vmatprep.subr.bf16.mxu1 %v504_v25 }
  0x1c   :  { %448 = vmatpush3.bf16.msra.mxu0 %v505_v26 }
  0x1d   :  { %470 = vmatpush3.bf16.msra.mxu1 %v506_v27  ;;  %449 = vmatprep.subr.bf16.mxu0 %v507_v28 }
  0x1e   :  { %471 = vmatprep.subr.bf16.mxu1 %v508_v29 }
  0x20   :  { %450 = vmatpush3.bf16.msra.mxu0 %v509_v30 }
  0x21   :  { %472 = vmatpush3.bf16.msra.mxu1 %v510_v31 }
  0x23   :  { %338 = vmatmul.mubr.bf16.vlgmr.msra.gmra.mrb[0].mxu0 %v511_v32 }
  0x24   :  { %379 = vmatmul.mubr.bf16.vlgmr.msra.gmra.mrb[0].mxu1 %v514_v34 }
  0xf6   :  { %v451_v36 = vpop.f32.mrb[0].mxu0 }
  0xf7   :  { %v473_v37 = vpop.f32.mrb[0].mxu1  ;;  %v452_v39 = vpop.f32.mrb[1].mxu0 }
  0xf8   :  { %v453_v40 = vadd.f32 %v452_v39, %v451_v36  ;;  %v474_v41 = vpop.f32.mrb[1].mxu1  ;;  %v454_v42 = vpop.f32.mrb[2].mxu0 }
  0xf9   :  { %v475_v43 = vadd.f32 %v474_v41, %v473_v37  ;;  %v476_v44 = vpop.f32.mrb[2].mxu1  ;;  %v455_v45 = vpop.f32.mrb[3].mxu0 }
  0xfa   :  { %v340_v46 = vadd.f32 %v453_v40, %v398_v38  ;;  %v456_v47 = vadd.f32 %v455_v45, %v454_v42  ;;  %v477_v48 = vpop.f32.mrb[3].mxu1 }
  0xfb   :  { %v478_v50 = vadd.f32 %v477_v48, %v476_v44 }
  0xfc   :  { %v381_v51 = vadd.f32 %v475_v43, %v340_v46  ;;  %v343_v52 = vadd.f32 %v456_v47, %v398_v38 }
  0xfe   :  { %v389_v54 = vadd.f32 %v387_v49, %v381_v51  ;;  %v384_v55 = vadd.f32 %v478_v50, %v343_v52 }
 0x100   :  { %392 = vst.msk [vmem:[%s669_s4] sm:$0xff] %vm391_vm0, %v389_v54  ;;  %v390_v56 = vadd.f32 %v388_v53, %v384_v55 }
 0x102   :  { %393 = vst.msk [vmem:[%s669_s4 + $0x8] sm:$0xff] %vm391_vm0, %v390_v56 }

// kernel: predict_structure.17
= control target key start
LH: loop header
LB: loop body
LE: loop exit
PB: predicated region body
PF: predicated region fallthrough
CT: control target
= control target key end

     0   :  { %vm25_vm0 = vcmask 261120   ;;  %v178_v15 = vmov 0.0   ;;  %vm179_vm1 = vmmov 0   ;;  %s257_s0 = inlined_call_operand.vmem [shape: f32[16,32], index: 0, kind: input, shape index: {}]   ;;  %s258_s3 = inlined_call_operand.vmem [shape: bf16[32,32], index: 3, kind: input, shape index: {}]   ;;  %s259_s1 = inlined_call_operand.vmem [shape: f32[1,32], index: 1, kind: input, shape index: {}]   ;;  %s260_s2 = inlined_call_operand.vmem [shape: f32[1,32], index: 2, kind: input, shape index: {}]   ;;  %s261_s5 = inlined_call_operand.vmem [shape: f32[16,32], index: 5, kind: output, shape index: {0}]   ;;  %s262_s4 = inlined_call_operand.vmem [shape: f32[1,32], index: 4, kind: input, shape index: {}]   ;;  %s263_s6 = inlined_call_operand.vmem [shape: f32[16,32], index: 6, kind: output, shape index: {1}]  }
   0x1   :  { %v23_v0 = vld [vmem:[%s257_s0] sm:$0xff]  ;;  %v24_v1 = vld [vmem:[%s257_s0 + $0x8] sm:$0xff]  ;;  %162 = vmatprep.subr.bf16.mxu0 %v178_v15  ;;  %166 = vmatprep.mubr.msk.bf16.mxu0 %vm179_vm1, %v178_v15 }
   0x2   :  { %v26_v2 = vsel %vm25_vm0, %v23_v0, 0.0  ;;  %v29_v3 = vsel %vm25_vm0, %v24_v1, 0.0  ;;  %v172_v14 = vld [vmem:[%s258_s3] sm:$0xff]   ;;  %v173_v16 = vld [vmem:[%s258_s3 + $0x8] sm:$0xff]  }
   0x3   :  { %27 = vadd.xlane.f32.xlu0 %v26_v2  ;;  %163 = vmatpush3.bf16.msra.mxu0 %v172_v14  ;;  %v153_v24 = vld [vmem:[%s259_s1] ss:$0 sm:$0xff] }
   0x4   :  { %164 = vmatprep.subr.bf16.mxu0 %v178_v15  ;;  %v154_v26 = vld [vmem:[%s260_s2] ss:$0 sm:$0xff] }
   0x5   :  { %v155_v34 = vld [vmem:[%s262_s4] ss:$0 sm:$0xff] }
   0x7   :  { %30 = vadd.xlane.f32.xlu0 %v29_v3  ;;  %165 = vmatpush3.bf16.msra.mxu0 %v173_v16 }
  0x90   :  { %v28_v4 = vpop.xlane.xlu0 %27 }
  0x91   :  { %v33_v5 = vmul.f32 0.03125, %v28_v4 }
  0x93   :  { %v35_v6 = vsub.f32 %v23_v0, %v33_v5 }
  0x94   :  { %v31_v7 = vpop.xlane.xlu0 %30 }
  0x95   :  { %v34_v8 = vmul.f32 0.03125, %v31_v7  ;;  %v37_v9 = vmul.f32 %v35_v6, %v35_v6 }
  0x97   :  { %v36_v10 = vsub.f32 %v24_v1, %v34_v8  ;;  %v39_v11 = vsel %vm25_vm0, %v37_v9, 0.0 }
  0x98   :  { %40 = vadd.xlane.f32.xlu1 %v39_v11 }
  0x99   :  { %v38_v12 = vmul.f32 %v36_v10, %v36_v10 }
  0x9b   :  { %v42_v13 = vsel %vm25_vm0, %v38_v12, 0.0 }
  0x9c   :  { %43 = vadd.xlane.f32.xlu1 %v42_v13 }
 0x125   :  { %v41_v17 = vpop.xlane.xlu1 %40 }
 0x126   :  { %v45_v18 = vmul.f32 0.03125, %v41_v17 }
 0x128   :  { %v47_v19 = vadd.f32 1e-05, %v45_v18 }
 0x129   :  { %v44_v20 = vpop.xlane.xlu1 %43 }
 0x12a   :  { %174 = vrsqrt.f32 %v47_v19  ;;  %v46_v21 = vmul.f32 0.03125, %v44_v20 }
 0x12c   :  { %v48_v22 = vadd.f32 1e-05, %v46_v21 }
 0x12e   :  { %176 = vrsqrt.f32 %v48_v22 }
 0x134   :  { %v175_v23 = vpop.eup %174 }
 0x135   :  { %v51_v25 = vmul.f32 %v175_v23, %v35_v6 }
 0x137   :  { %v60_v27 = vmul.f32 %v153_v24, %v51_v25 }
 0x138   :  { %v177_v28 = vpop.eup %176 }
 0x139   :  { %v52_v29 = vmul.f32 %v177_v28, %v36_v10  ;;  %v69_v30 = vadd.f32 %v154_v26, %v60_v27 }
 0x13b   :  { %v61_v31 = vmul.f32 %v153_v24, %v52_v29  ;;  %71 = vst.msk [vmem:[%s261_s5] sm:$0xff] %vm25_vm0, %v69_v30 }
 0x13d   :  { %v70_v32 = vadd.f32 %v154_v26, %v61_v31 }
 0x13f   :  { %72 = vst.msk [vmem:[%s261_s5 + $0x8] sm:$0xff] %vm25_vm0, %v70_v32  ;;  %v73_v33 = vpack.c.bf16 %v70_v32, %v69_v30 }
 0x141   :  { %167 = vmatmul.mubr.msk.bf16.vlgmr.msra.gmra.mrb[0].mxu0 %vm25_vm0, %v73_v33 }
 0x214   :  { %v134_v35 = vpop.f32.mrb[0].mxu0 }
 0x215   :  { %v135_v36 = vadd.f32 %v155_v34, %v134_v35  ;;  %v168_v37 = vpop.f32.mrb[1].mxu0 }
 0x216   :  { %v137_v38 = vpop.f32.mrb[2].mxu0 }
 0x217   :  { %v141_v39 = vmax.f32 %v135_v36, 0.0  ;;  %v138_v40 = vadd.f32 %v155_v34, %v137_v38  ;;  %v169_v41 = vpop.f32.mrb[3].mxu0 }
 0x219   :  { %143 = vst.msk [vmem:[%s263_s6] sm:$0xff] %vm25_vm0, %v141_v39  ;;  %v142_v42 = vmax.f32 %v138_v40, 0.0 }
 0x21b   :  { %144 = vst.msk [vmem:[%s263_s6 + $0x8] sm:$0xff] %vm25_vm0, %v142_v42 }

// kernel: predict_structure.18
= control target key start
LH: loop header
LB: loop body
LE: loop exit
PB: predicated region body
PF: predicated region fallthrough
CT: control target
= control target key end

     0   :  { %v268_v0 = vmov 0.0   ;;  %vm269_vm0 = vmmov 0   ;;  %vm56_vm1 = vcmask 261120   ;;  %s365_s1 = inlined_call_operand.vmem [shape: bf16[32,32], index: 1, kind: input, shape index: {}]   ;;  %s366_s0 = inlined_call_operand.vmem [shape: f32[16,32], index: 0, kind: input, shape index: {}]   ;;  %s367_s3 = inlined_call_operand.vmem [shape: bf16[32,32], index: 3, kind: input, shape index: {}]   ;;  %s368_s2 = inlined_call_operand.vmem [shape: f32[1,32], index: 2, kind: input, shape index: {}]   ;;  %s369_s4 = inlined_call_operand.vmem [shape: f32[1,32], index: 4, kind: input, shape index: {}]   ;;  %s370_s5 = inlined_call_operand.vmem [shape: f32[16,32], index: 5, kind: input, shape index: {}]   ;;  %s371_s6 = inlined_call_operand.vmem [shape: f32[1,32], index: 6, kind: input, shape index: {}]   ;;  %s372_s7 = inlined_call_operand.vmem [shape: f32[1,32], index: 7, kind: input, shape index: {}]   ;;  %s373_s8 = inlined_call_operand.vmem [shape: f32[16,32], index: 8, kind: output, shape index: {}]  }
   0x1   :  { %242 = vmatprep.subr.bf16.mxu0 %v268_v0  ;;  %v260_v1 = vld [vmem:[%s365_s1] sm:$0xff]   ;;  %246 = vmatprep.mubr.msk.bf16.mxu0 %vm269_vm0, %v268_v0  ;;  %v261_v2 = vld [vmem:[%s365_s1 + $0x8] sm:$0xff]  }
   0x2   :  { %250 = vmatprep.subr.bf16.mxu1 %v268_v0  ;;  %254 = vmatprep.mubr.msk.bf16.mxu1 %vm269_vm0, %v268_v0  ;;  %v30_v3 = vld [vmem:[%s366_s0] sm:$0xff]  ;;  %v31_v4 = vld [vmem:[%s366_s0 + $0x8] sm:$0xff] }
   0x3   :  { %243 = vmatpush3.bf16.msra.mxu0 %v260_v1  ;;  %v32_v5 = vpack.c.bf16 %v31_v4, %v30_v3  ;;  %v262_v6 = vld [vmem:[%s367_s3] sm:$0xff]   ;;  %v263_v7 = vld [vmem:[%s367_s3 + $0x8] sm:$0xff]  }
   0x4   :  { %244 = vmatprep.subr.bf16.mxu0 %v268_v0  ;;  %251 = vmatpush3.bf16.msra.mxu1 %v262_v6  ;;  %v226_v8 = vld [vmem:[%s368_s2] ss:$0 sm:$0xff]  ;;  %v172_v24 = vld [vmem:[%s370_s5 + $0x8] sm:$0xff] }
   0x5   :  { %252 = vmatprep.subr.bf16.mxu1 %v268_v0  ;;  %v230_v18 = vld [vmem:[%s369_s4] ss:$0 sm:$0xff] }
   0x6   :  { %v171_v20 = vld [vmem:[%s370_s5] sm:$0xff] }
   0x7   :  { %245 = vmatpush3.bf16.msra.mxu0 %v261_v2  ;;  %v234_v48 = vld [vmem:[%s371_s6] ss:$0 sm:$0xff] }
   0x8   :  { %253 = vmatpush3.bf16.msra.mxu1 %v263_v7  ;;  %v235_v50 = vld [vmem:[%s372_s7] ss:$0 sm:$0xff] }
   0xa   :  { %247 = vmatmul.mubr.msk.bf16.vlgmr.msra.gmra.mrb[0].mxu0 %vm56_vm1, %v32_v5 }
  0xdd   :  { %v94_v9 = vpop.f32.mrb[0].mxu0 }
  0xde   :  { %v95_v10 = vadd.f32 %v226_v8, %v94_v9  ;;  %v248_v11 = vpop.f32.mrb[1].mxu0 }
  0xdf   :  { %v97_v12 = vpop.f32.mrb[2].mxu0 }
  0xe0   :  { %v98_v13 = vadd.f32 %v226_v8, %v97_v12  ;;  %v249_v14 = vpop.f32.mrb[3].mxu0  ;;  %v101_v15 = vmax.f32 %v95_v10, 0.0 }
  0xe2   :  { %v102_v16 = vmax.f32 %v98_v13, 0.0 }
  0xe4   :  { %v103_v17 = vpack.c.bf16 %v102_v16, %v101_v15 }
  0xe6   :  { %255 = vmatmul.mubr.msk.bf16.vlgmr.msra.gmra.mrb[0].mxu1 %vm56_vm1, %v103_v17 }
 0x1b9   :  { %v164_v19 = vpop.f32.mrb[0].mxu1 }
 0x1ba   :  { %v165_v21 = vadd.f32 %v230_v18, %v164_v19  ;;  %v256_v22 = vpop.f32.mrb[1].mxu1 }
 0x1bb   :  { %v167_v23 = vpop.f32.mrb[2].mxu1 }
 0x1bc   :  { %v168_v25 = vadd.f32 %v230_v18, %v167_v23  ;;  %v257_v26 = vpop.f32.mrb[3].mxu1  ;;  %v173_v27 = vadd.f32 %v171_v20, %v165_v21 }
 0x1be   :  { %v175_v28 = vsel %vm56_vm1, %v173_v27, 0.0  ;;  %v174_v29 = vadd.f32 %v172_v24, %v168_v25 }
 0x1bf   :  { %176 = vadd.xlane.f32.xlu0 %v175_v28 }
 0x1c0   :  { %v178_v30 = vsel %vm56_vm1, %v174_v29, 0.0 }
 0x1c3   :  { %179 = vadd.xlane.f32.xlu0 %v178_v30 }
 0x24c   :  { %v177_v31 = vpop.xlane.xlu0 %176 }
 0x24d   :  { %v182_v32 = vmul.f32 0.03125, %v177_v31 }
 0x24f   :  { %v184_v33 = vsub.f32 %v173_v27, %v182_v32 }
 0x250   :  { %v180_v34 = vpop.xlane.xlu0 %179 }
 0x251   :  { %v183_v35 = vmul.f32 0.03125, %v180_v34  ;;  %v186_v36 = vmul.f32 %v184_v33, %v184_v33 }
 0x253   :  { %v185_v37 = vsub.f32 %v174_v29, %v183_v35  ;;  %v188_v38 = vsel %vm56_vm1, %v186_v36, 0.0 }
 0x254   :  { %189 = vadd.xlane.f32.xlu1 %v188_v38 }
 0x255   :  { %v187_v39 = vmul.f32 %v185_v37, %v185_v37 }
 0x257   :  { %v191_v40 = vsel %vm56_vm1, %v187_v39, 0.0 }
 0x258   :  { %192 = vadd.xlane.f32.xlu1 %v191_v40 }
 0x2e1   :  { %v190_v41 = vpop.xlane.xlu1 %189 }
 0x2e2   :  { %v194_v42 = vmul.f32 0.03125, %v190_v41 }
 0x2e4   :  { %v196_v43 = vadd.f32 1e-05, %v194_v42 }
 0x2e5   :  { %v193_v44 = vpop.xlane.xlu1 %192 }
 0x2e6   :  { %264 = vrsqrt.f32 %v196_v43  ;;  %v195_v45 = vmul.f32 0.03125, %v193_v44 }
 0x2e8   :  { %v197_v46 = vadd.f32 1e-05, %v195_v45 }
 0x2ea   :  { %266 = vrsqrt.f32 %v197_v46 }
 0x2f0   :  { %v265_v47 = vpop.eup %264 }
 0x2f1   :  { %v200_v49 = vmul.f32 %v265_v47, %v184_v33 }
 0x2f3   :  { %v209_v51 = vmul.f32 %v234_v48, %v200_v49 }
 0x2f4   :  { %v267_v52 = vpop.eup %266 }
 0x2f5   :  { %v218_v53 = vadd.f32 %v235_v50, %v209_v51  ;;  %v201_v54 = vmul.f32 %v267_v52, %v185_v37 }
 0x2f7   :  { %220 = vst.msk [vmem:[%s373_s8] sm:$0xff] %vm56_vm1, %v218_v53  ;;  %v210_v55 = vmul.f32 %v234_v48, %v201_v54 }
 0x2f9   :  { %v219_v56 = vadd.f32 %v235_v50, %v210_v55 }
 0x2fb   :  { %221 = vst.msk [vmem:[%s373_s8 + $0x8] sm:$0xff] %vm56_vm1, %v219_v56 }

// kernel: predict_structure.19
= control target key start
LH: loop header
LB: loop body
LE: loop exit
PB: predicated region body
PF: predicated region fallthrough
CT: control target
= control target key end

     0   :  { %v118_v0 = vmov 0.0   ;;  %vm119_vm0 = vmmov 0   ;;  %vm45_vm1 = vcmask 261120   ;;  %vm90_vm2 = vcmask 48128   ;;  %s158_s1 = inlined_call_operand.vmem [shape: bf16[32,6], index: 1, kind: input, shape index: {}]   ;;  %s159_s0 = inlined_call_operand.vmem [shape: bf16[16,32], index: 0, kind: input, shape index: {}]   ;;  %s160_s2 = inlined_call_operand.vmem [shape: f32[1,6], index: 2, kind: input, shape index: {}]   ;;  %s161_s3 = inlined_call_operand.vmem [shape: f32[16,6], index: 3, kind: output, shape index: {}]  }
   0x1   :  { %105 = vmatprep.subr.bf16.mxu0 %v118_v0  ;;  %v115_v1 = vld [vmem:[%s158_s1] sm:$0xff]   ;;  %109 = vmatprep.mubr.msk.bf16.mxu0 %vm119_vm0, %v118_v0  ;;  %v116_v2 = vld [vmem:[%s158_s1 + $0x8] sm:$0xff]  }
   0x2   :  { %106 = vmatpush3.bf16.msra.mxu0 %v115_v1  ;;  %v117_v3 = vld [vmem:[%s159_s0] sm:$0xff]  }
   0x3   :  { %107 = vmatprep.subr.bf16.mxu0 %v118_v0  ;;  %v97_v4 = vld [vmem:[%s160_s2] ss:$0 sm:$0xff] }
   0x6   :  { %108 = vmatpush3.bf16.msra.mxu0 %v116_v2 }
   0x9   :  { %110 = vmatmul.mubr.msk.bf16.vlgmr.msra.gmra.mrb[0].mxu0 %vm45_vm1, %v117_v3 }
  0xdc   :  { %v83_v5 = vpop.f32.mrb[0].mxu0 }
  0xdd   :  { %v84_v6 = vadd.f32 %v97_v4, %v83_v5  ;;  %v111_v7 = vpop.f32.mrb[1].mxu0 }
  0xde   :  { %v86_v8 = vpop.f32.mrb[2].mxu0 }
  0xdf   :  { %91 = vst.msk [vmem:[%s161_s3] sm:$0xff] %vm90_vm2, %v84_v6  ;;  %v87_v9 = vadd.f32 %v97_v4, %v86_v8  ;;  %v112_v10 = vpop.f32.mrb[3].mxu0 }
  0xe1   :  { %92 = vst.msk [vmem:[%s161_s3 + $0x8] sm:$0xff] %vm90_vm2, %v87_v9 }

// kernel: predict_structure.13
= control target key start
LH: loop header
LB: loop body
LE: loop exit
PB: predicated region body
PF: predicated region fallthrough
CT: control target
= control target key end

     0   :  { %v118_v0 = vmov 0.0   ;;  %vm119_vm0 = vmmov 0   ;;  %vm45_vm1 = vcmask 261120   ;;  %vm90_vm2 = vcmask 23552   ;;  %s158_s1 = inlined_call_operand.vmem [shape: bf16[32,3], index: 1, kind: input, shape index: {}]   ;;  %s159_s0 = inlined_call_operand.vmem [shape: bf16[16,32], index: 0, kind: input, shape index: {}]   ;;  %s160_s2 = inlined_call_operand.vmem [shape: f32[1,3], index: 2, kind: input, shape index: {}]   ;;  %s161_s3 = inlined_call_operand.vmem [shape: f32[16,3], index: 3, kind: output, shape index: {}]  }
   0x1   :  { %105 = vmatprep.subr.bf16.mxu0 %v118_v0  ;;  %v115_v1 = vld [vmem:[%s158_s1] sm:$0xff]   ;;  %109 = vmatprep.mubr.msk.bf16.mxu0 %vm119_vm0, %v118_v0  ;;  %v116_v2 = vld [vmem:[%s158_s1 + $0x8] sm:$0xff]  }
   0x2   :  { %106 = vmatpush3.bf16.msra.mxu0 %v115_v1  ;;  %v117_v3 = vld [vmem:[%s159_s0] sm:$0xff]  }
   0x3   :  { %107 = vmatprep.subr.bf16.mxu0 %v118_v0  ;;  %v97_v4 = vld [vmem:[%s160_s2] ss:$0 sm:$0xff] }
   0x6   :  { %108 = vmatpush3.bf16.msra.mxu0 %v116_v2 }
   0x9   :  { %110 = vmatmul.mubr.msk.bf16.vlgmr.msra.gmra.mrb[0].mxu0 %vm45_vm1, %v117_v3 }
  0xdc   :  { %v83_v5 = vpop.f32.mrb[0].mxu0 }
  0xdd   :  { %v84_v6 = vadd.f32 %v97_v4, %v83_v5  ;;  %v111_v7 = vpop.f32.mrb[1].mxu0 }
  0xde   :  { %v86_v8 = vpop.f32.mrb[2].mxu0 }
  0xdf   :  { %91 = vst.msk [vmem:[%s161_s3] sm:$0xff] %vm90_vm2, %v84_v6  ;;  %v87_v9 = vadd.f32 %v97_v4, %v86_v8  ;;  %v112_v10 = vpop.f32.mrb[3].mxu0 }
  0xe1   :  { %92 = vst.msk [vmem:[%s161_s3 + $0x8] sm:$0xff] %vm90_vm2, %v87_v9 }

</bundles_post_ra>
